<compile_context>
chip_gen: v6e
topology: v6e:2x2x1
jax: 0.10.0
libtpu: 0.0.40
codegen_flags: <defaults>
</compile_context>

<pallas_src>
import functools

import numpy as np
import jax
import jax.numpy as jnp
from jax.experimental import pallas as pl
from jax.experimental.pallas import tpu as pltpu


# ---------------------------------------------------------------------------
# Static relative-position index (identical to the PyTorch buffer).
# ---------------------------------------------------------------------------
def make_relative_index(ih: int, iw: int) -> jnp.ndarray:
    coords = np.stack(np.meshgrid(np.arange(ih), np.arange(iw), indexing="ij"))
    coords = coords.reshape(2, -1)                        # (2, N)
    rel = coords[:, :, None] - coords[:, None, :]         # (2, N, N)
    rel[0] += ih - 1
    rel[1] += iw - 1
    rel[0] *= 2 * iw - 1
    rel = rel.transpose(1, 2, 0).sum(-1).reshape(-1)      # (N*N,)
    return jnp.asarray(rel, dtype=jnp.int32)


# ---------------------------------------------------------------------------
# Fused attention kernel (one batch element per grid step, all in VMEM).
# ---------------------------------------------------------------------------
def _attention_context(x, w_qkv, bias_ref, *, heads, dim_head, scale):
    """x: (N, inp), w_qkv: (inp, 3*inner), bias_ref: (H, N, N) -> (N, inner)."""
    inner = heads * dim_head
    # QKV projection: single 2-D matmul on the MXU, f32 accumulation.
    qkv = jnp.dot(x, w_qkv, preferred_element_type=jnp.float32).astype(x.dtype)

    parts = []
    for h in range(heads):                                # unrolled, static slices
        q = qkv[:, h * dim_head:(h + 1) * dim_head]
        k = qkv[:, inner + h * dim_head: inner + (h + 1) * dim_head]
        v = qkv[:, 2 * inner + h * dim_head: 2 * inner + (h + 1) * dim_head]
        # Fold the softmax scale into q (N*d mults instead of N*N).
        q = q * jnp.asarray(scale, dtype=q.dtype)

        dots = jnp.einsum("nd,md->nm", q, k,
                          preferred_element_type=jnp.float32)       # (N, N) f32
        dots = dots + bias_ref[h].astype(jnp.float32)

        m = jnp.max(dots, axis=-1, keepdims=True)
        e = jnp.exp(dots - m)
        s = jnp.sum(e, axis=-1, keepdims=True)
        attn = e * pl.reciprocal(s, approx=True)          # row-sum reciprocal on EUP

        ctx_h = jnp.einsum("nm,md->nd", attn.astype(v.dtype), v,
                           preferred_element_type=jnp.float32)
        parts.append(ctx_h.astype(x.dtype))

    return parts[0] if heads == 1 else jnp.concatenate(parts, axis=-1)  # (N, inner)


def _fused_kernel_proj(x_ref, w_qkv_ref, bias_ref, w_out_ref, b_out_ref, o_ref,
                       *, heads, dim_head, scale):
    x = x_ref[...]                                        # (N, inp)
    ctx = _attention_context(x, w_qkv_ref[...], bias_ref,
                             heads=heads, dim_head=dim_head, scale=scale)
    out = jnp.dot(ctx, w_out_ref[...], preferred_element_type=jnp.float32)
    out = out + b_out_ref[...].astype(jnp.float32)        # (1, oup) broadcast
    o_ref[...] = out.astype(o_ref.dtype)


def _fused_kernel_noproj(x_ref, w_qkv_ref, bias_ref, o_ref,
                         *, heads, dim_head, scale):
    x = x_ref[...]
    ctx = _attention_context(x, w_qkv_ref[...], bias_ref,
                             heads=heads, dim_head=dim_head, scale=scale)
    o_ref[...] = ctx.astype(o_ref.dtype)


# ---------------------------------------------------------------------------
# Full Attention forward.
# ---------------------------------------------------------------------------
@functools.partial(jax.jit, static_argnames=("heads", "dim_head"))
def attention_forward(x, w_qkv, w_out, b_out, rel_bias_table, rel_index,
                      *, heads, dim_head):
    """x: (B, N, inp) with N = ih*iw.  Returns (B, N, oup)."""
    B, N, inp = x.shape
    inner = heads * dim_head
    scale = float(dim_head) ** -0.5
    project_out = not (heads == 1 and dim_head == inp)
    oup = w_out.shape[1] if project_out else inner

    # Relative position bias: tiny static-index gather in plain JAX, cast to
    # the compute dtype (it stays resident in VMEM across all grid steps).
    rel_bias = jnp.take(rel_bias_table, rel_index, axis=0)        # (N*N, H)
    rel_bias = rel_bias.reshape(N, N, heads).transpose(2, 0, 1)   # (H, N, N)
    rel_bias = rel_bias.astype(x.dtype)

    itemsize = jnp.dtype(x.dtype).itemsize
    flops = 2 * B * N * inp * 3 * inner + 4 * B * heads * N * N * dim_head
    if project_out:
        flops += 2 * B * N * inner * oup
    cost = pl.CostEstimate(
        flops=flops,
        transcendentals=B * heads * N * N + B * heads * N,
        bytes_accessed=(B * N * inp + inp * 3 * inner + heads * N * N
                        + (inner * oup + oup if project_out else 0)
                        + B * N * oup) * itemsize,
    )

    x_spec = pl.BlockSpec((None, N, inp), lambda b: (b, 0, 0))
    wqkv_spec = pl.BlockSpec((inp, 3 * inner), lambda b: (0, 0))
    bias_spec = pl.BlockSpec((heads, N, N), lambda b: (0, 0, 0))
    out_spec = pl.BlockSpec((None, N, oup), lambda b: (b, 0, 0))

    if project_out:
        kernel = functools.partial(_fused_kernel_proj,
                                   heads=heads, dim_head=dim_head, scale=scale)
        in_specs = [
            x_spec,
            wqkv_spec,
            bias_spec,
            pl.BlockSpec((inner, oup), lambda b: (0, 0)),
            pl.BlockSpec((1, oup), lambda b: (0, 0)),
        ]
        args = (x, w_qkv, rel_bias, w_out, b_out.reshape(1, oup))
    else:
        kernel = functools.partial(_fused_kernel_noproj,
                                   heads=heads, dim_head=dim_head, scale=scale)
        in_specs = [x_spec, wqkv_spec, bias_spec]
        args = (x, w_qkv, rel_bias)

    out = pl.pallas_call(
        kernel,
        out_shape=jax.ShapeDtypeStruct((B, N, oup), x.dtype),
        grid_spec=pltpu.PrefetchScalarGridSpec(
            num_scalar_prefetch=0,
            grid=(B,),
            in_specs=in_specs,
            out_specs=out_spec,
        ),
        compiler_params=pltpu.CompilerParams(dimension_semantics=("parallel",)),
        cost_estimate=cost,
    )(*args)
    return out


# ---------------------------------------------------------------------------
# Pure-JAX reference (mirrors the PyTorch forward exactly).
# ---------------------------------------------------------------------------
def _reference(x, w_qkv, w_out, b_out, rel_bias_table, rel_index, heads, dim_head):
    B, N, inp = x.shape
    inner = heads * dim_head
    scale = dim_head ** -0.5
    qkv = (x @ w_qkv).reshape(B, N, 3, heads, dim_head)
    q, k, v = (jnp.transpose(qkv[:, :, i], (0, 2, 1, 3)) for i in range(3))
    dots = jnp.einsum("bhnd,bhmd->bhnm", q, k) * scale
    bias = jnp.take(rel_bias_table, rel_index, axis=0)
    bias = bias.reshape(N, N, heads).transpose(2, 0, 1)
    dots = dots + bias[None]
    attn = jax.nn.softmax(dots, axis=-1)
    out = jnp.einsum("bhnm,bhmd->bhnd", attn, v)
    out = jnp.transpose(out, (0, 2, 1, 3)).reshape(B, N, inner)
    project_out = not (heads == 1 and dim_head == inp)
    return out @ w_out + b_out if project_out else out


if __name__ == "__main__":
    # Small shapes consistent with the module: image_size=(4,4) -> seq N=16.
    B = 2
    ih, iw = 4, 4
    N = ih * iw
    inp = 32
    oup = 32
    heads = 8
    dim_head = 32
    inner = heads * dim_head

    key = jax.random.PRNGKey(0)
    kx, k1, k2, k3, k4 = jax.random.split(key, 5)
    x = jax.random.normal(kx, (B, N, inp), jnp.float32)

    # PyTorch-Linear-style init, stored as (in, out) so kernels do x @ W.
    lim_qkv = 1.0 / float(np.sqrt(inp))
    w_qkv = jax.random.uniform(k1, (inp, 3 * inner), jnp.float32, -lim_qkv, lim_qkv)
    lim_out = 1.0 / float(np.sqrt(inner))
    w_out = jax.random.uniform(k2, (inner, oup), jnp.float32, -lim_out, lim_out)
    b_out = jax.random.uniform(k3, (oup,), jnp.float32, -lim_out, lim_out)
    # PyTorch initializes the table to zeros; use small random values so the
    # relative-bias path is actually exercised numerically.
    rel_table = 0.02 * jax.random.normal(
        k4, ((2 * ih - 1) * (2 * iw - 1), heads), jnp.float32)

    rel_index = make_relative_index(ih, iw)

    out = attention_forward(x, w_qkv, w_out, b_out, rel_table, rel_index,
                            heads=heads, dim_head=dim_head)
    out = jax.block_until_ready(out)

    ref = _reference(x, w_qkv, w_out, b_out, rel_table, rel_index, heads, dim_head)
    assert out.shape == (B, N, oup)
    # approx reciprocal in the softmax normalization -> slightly looser tol.
    assert jnp.allclose(out, ref, atol=2e-3, rtol=2e-3), "mismatch vs reference"

    print("KERNEL_OK")
</pallas_src>

<mosaic_0001>
module attributes {stable_mosaic.version = 11 : i64} {
  func.func @_fused_kernel_proj(%arg0: i32, %arg1: memref<1x16x32xf32, #tpu.memory_space<vmem>>, %arg2: memref<32x768xf32, #tpu.memory_space<vmem>>, %arg3: memref<8x16x16xf32, #tpu.memory_space<vmem>>, %arg4: memref<256x32xf32, #tpu.memory_space<vmem>>, %arg5: memref<1x32xf32, #tpu.memory_space<vmem>>, %arg6: memref<1x16x32xf32, #tpu.memory_space<vmem>>) attributes {dimension_semantics = [#tpu.dimension_semantics<parallel>], iteration_bounds = array<i64: 2>, scalar_prefetch = 0 : i64, scratch_operands = 0 : i64, tpu.core_type = #tpu.core_type<tc>, window_params = [{transform_indices = @transform_0, window_bounds = array<i64: 1, 16, 32>}, {pipeline_mode = #tpu.pipeline_mode<synchronous>, transform_indices = @transform_1, window_bounds = array<i64: 32, 768>}, {pipeline_mode = #tpu.pipeline_mode<synchronous>, transform_indices = @transform_2, window_bounds = array<i64: 8, 16, 16>}, {pipeline_mode = #tpu.pipeline_mode<synchronous>, transform_indices = @transform_3, window_bounds = array<i64: 256, 32>}, {pipeline_mode = #tpu.pipeline_mode<synchronous>, transform_indices = @transform_4, window_bounds = array<i64: 1, 32>}, {transform_indices = @transform_5, window_bounds = array<i64: 1, 16, 32>}]} {
    %c0 = arith.constant 0 : index
    %c0_0 = arith.constant 0 : index
    %c0_1 = arith.constant 0 : index
    %0 = vector.load %arg1[%c0, %c0_0, %c0_1] : memref<1x16x32xf32, #tpu.memory_space<vmem>>, vector<1x16x32xf32>
    %1 = vector.shape_cast %0 : vector<1x16x32xf32> to vector<16x32xf32>
    %c0_2 = arith.constant 0 : index
    %c0_3 = arith.constant 0 : index
    %2 = vector.load %arg2[%c0_2, %c0_3] : memref<32x768xf32, #tpu.memory_space<vmem>>, vector<32x768xf32>
    %cst = arith.constant dense<0.000000e+00> : vector<16x768xf32>
    %3 = tpu.matmul %1, %2, %cst {dimension_numbers = #tpu.dot_dimension_numbers<[1], [0], [0], [1], [0, 0, 1, 1], [], []>} : vector<16x32xf32>, vector<32x768xf32>, vector<16x768xf32> -> vector<16x768xf32>
    %4 = vector.extract_strided_slice %3 {offsets = [0, 0], sizes = [16, 32], strides = [1, 1]} : vector<16x768xf32> to vector<16x32xf32>
    %5 = vector.extract_strided_slice %3 {offsets = [0, 256], sizes = [16, 32], strides = [1, 1]} : vector<16x768xf32> to vector<16x32xf32>
    %6 = vector.extract_strided_slice %3 {offsets = [0, 512], sizes = [16, 32], strides = [1, 1]} : vector<16x768xf32> to vector<16x32xf32>
    %cst_4 = arith.constant 0.176776692 : f32
    %7 = vector.broadcast %cst_4 : f32 to vector<16x32xf32>
    %8 = arith.mulf %4, %7 : vector<16x32xf32>
    "tpu.trace_start"() <{level = 10 : i32, message = "nd,md->nm"}> : () -> ()
    %cst_5 = arith.constant dense<0.000000e+00> : vector<16x16xf32>
    %9 = tpu.matmul %8, %5, %cst_5 {dimension_numbers = #tpu.dot_dimension_numbers<[1], [1], [0], [0], [0, 0, 1, 0], [], []>} : vector<16x32xf32>, vector<16x32xf32>, vector<16x16xf32> -> vector<16x16xf32>
    "tpu.trace_stop"() : () -> ()
    %c0_6 = arith.constant 0 : index
    %c0_7 = arith.constant 0 : index
    %c0_8 = arith.constant 0 : index
    %10 = vector.load %arg3[%c0_6, %c0_7, %c0_8] : memref<8x16x16xf32, #tpu.memory_space<vmem>>, vector<1x16x16xf32>
    %11 = vector.shape_cast %10 : vector<1x16x16xf32> to vector<16x16xf32>
    %12 = arith.addf %9, %11 : vector<16x16xf32>
    %cst_9 = arith.constant dense<0xFF800000> : vector<16xf32>
    %13 = vector.multi_reduction <maximumf>, %12, %cst_9 [1] : vector<16x16xf32> to vector<16xf32>
    %14 = vector.shape_cast %13 : vector<16xf32> to vector<16x1xf32>
    %15 = vector.broadcast %14 : vector<16x1xf32> to vector<16x16xf32>
    %16 = arith.subf %12, %15 : vector<16x16xf32>
    %17 = math.exp %16 : vector<16x16xf32>
    %cst_10 = arith.constant dense<0.000000e+00> : vector<16xf32>
    %18 = vector.multi_reduction <add>, %17, %cst_10 [1] : vector<16x16xf32> to vector<16xf32>
    %19 = vector.shape_cast %18 : vector<16xf32> to vector<16x1xf32>
    %20 = tpu.reciprocal %19 {approx = true} : vector<16x1xf32> -> vector<16x1xf32>
    %21 = vector.broadcast %20 : vector<16x1xf32> to vector<16x16xf32>
    %22 = arith.mulf %17, %21 : vector<16x16xf32>
    "tpu.trace_start"() <{level = 10 : i32, message = "nm,md->nd"}> : () -> ()
    %cst_11 = arith.constant dense<0.000000e+00> : vector<16x32xf32>
    %23 = tpu.matmul %22, %6, %cst_11 {dimension_numbers = #tpu.dot_dimension_numbers<[1], [0], [0], [1], [0, 0, 1, 1], [], []>} : vector<16x16xf32>, vector<16x32xf32>, vector<16x32xf32> -> vector<16x32xf32>
    "tpu.trace_stop"() : () -> ()
    %24 = vector.extract_strided_slice %3 {offsets = [0, 32], sizes = [16, 32], strides = [1, 1]} : vector<16x768xf32> to vector<16x32xf32>
    %25 = vector.extract_strided_slice %3 {offsets = [0, 288], sizes = [16, 32], strides = [1, 1]} : vector<16x768xf32> to vector<16x32xf32>
    %26 = vector.extract_strided_slice %3 {offsets = [0, 544], sizes = [16, 32], strides = [1, 1]} : vector<16x768xf32> to vector<16x32xf32>
    %cst_12 = arith.constant 0.176776692 : f32
    %27 = vector.broadcast %cst_12 : f32 to vector<16x32xf32>
    %28 = arith.mulf %24, %27 : vector<16x32xf32>
    "tpu.trace_start"() <{level = 10 : i32, message = "nd,md->nm"}> : () -> ()
    %cst_13 = arith.constant dense<0.000000e+00> : vector<16x16xf32>
    %29 = tpu.matmul %28, %25, %cst_13 {dimension_numbers = #tpu.dot_dimension_numbers<[1], [1], [0], [0], [0, 0, 1, 0], [], []>} : vector<16x32xf32>, vector<16x32xf32>, vector<16x16xf32> -> vector<16x16xf32>
    "tpu.trace_stop"() : () -> ()
    %c1 = arith.constant 1 : index
    %c0_14 = arith.constant 0 : index
    %c0_15 = arith.constant 0 : index
    %30 = vector.load %arg3[%c1, %c0_14, %c0_15] : memref<8x16x16xf32, #tpu.memory_space<vmem>>, vector<1x16x16xf32>
    %31 = vector.shape_cast %30 : vector<1x16x16xf32> to vector<16x16xf32>
    %32 = arith.addf %29, %31 : vector<16x16xf32>
    %cst_16 = arith.constant dense<0xFF800000> : vector<16xf32>
    %33 = vector.multi_reduction <maximumf>, %32, %cst_16 [1] : vector<16x16xf32> to vector<16xf32>
    %34 = vector.shape_cast %33 : vector<16xf32> to vector<16x1xf32>
    %35 = vector.broadcast %34 : vector<16x1xf32> to vector<16x16xf32>
    %36 = arith.subf %32, %35 : vector<16x16xf32>
    %37 = math.exp %36 : vector<16x16xf32>
    %cst_17 = arith.constant dense<0.000000e+00> : vector<16xf32>
    %38 = vector.multi_reduction <add>, %37, %cst_17 [1] : vector<16x16xf32> to vector<16xf32>
    %39 = vector.shape_cast %38 : vector<16xf32> to vector<16x1xf32>
    %40 = tpu.reciprocal %39 {approx = true} : vector<16x1xf32> -> vector<16x1xf32>
    %41 = vector.broadcast %40 : vector<16x1xf32> to vector<16x16xf32>
    %42 = arith.mulf %37, %41 : vector<16x16xf32>
    "tpu.trace_start"() <{level = 10 : i32, message = "nm,md->nd"}> : () -> ()
    %cst_18 = arith.constant dense<0.000000e+00> : vector<16x32xf32>
    %43 = tpu.matmul %42, %26, %cst_18 {dimension_numbers = #tpu.dot_dimension_numbers<[1], [0], [0], [1], [0, 0, 1, 1], [], []>} : vector<16x16xf32>, vector<16x32xf32>, vector<16x32xf32> -> vector<16x32xf32>
    "tpu.trace_stop"() : () -> ()
    %44 = vector.extract_strided_slice %3 {offsets = [0, 64], sizes = [16, 32], strides = [1, 1]} : vector<16x768xf32> to vector<16x32xf32>
    %45 = vector.extract_strided_slice %3 {offsets = [0, 320], sizes = [16, 32], strides = [1, 1]} : vector<16x768xf32> to vector<16x32xf32>
    %46 = vector.extract_strided_slice %3 {offsets = [0, 576], sizes = [16, 32], strides = [1, 1]} : vector<16x768xf32> to vector<16x32xf32>
    %cst_19 = arith.constant 0.176776692 : f32
    %47 = vector.broadcast %cst_19 : f32 to vector<16x32xf32>
    %48 = arith.mulf %44, %47 : vector<16x32xf32>
    "tpu.trace_start"() <{level = 10 : i32, message = "nd,md->nm"}> : () -> ()
    %cst_20 = arith.constant dense<0.000000e+00> : vector<16x16xf32>
    %49 = tpu.matmul %48, %45, %cst_20 {dimension_numbers = #tpu.dot_dimension_numbers<[1], [1], [0], [0], [0, 0, 1, 0], [], []>} : vector<16x32xf32>, vector<16x32xf32>, vector<16x16xf32> -> vector<16x16xf32>
    "tpu.trace_stop"() : () -> ()
    %c2 = arith.constant 2 : index
    %c0_21 = arith.constant 0 : index
    %c0_22 = arith.constant 0 : index
    %50 = vector.load %arg3[%c2, %c0_21, %c0_22] : memref<8x16x16xf32, #tpu.memory_space<vmem>>, vector<1x16x16xf32>
    %51 = vector.shape_cast %50 : vector<1x16x16xf32> to vector<16x16xf32>
    %52 = arith.addf %49, %51 : vector<16x16xf32>
    %cst_23 = arith.constant dense<0xFF800000> : vector<16xf32>
    %53 = vector.multi_reduction <maximumf>, %52, %cst_23 [1] : vector<16x16xf32> to vector<16xf32>
    %54 = vector.shape_cast %53 : vector<16xf32> to vector<16x1xf32>
    %55 = vector.broadcast %54 : vector<16x1xf32> to vector<16x16xf32>
    %56 = arith.subf %52, %55 : vector<16x16xf32>
    %57 = math.exp %56 : vector<16x16xf32>
    %cst_24 = arith.constant dense<0.000000e+00> : vector<16xf32>
    %58 = vector.multi_reduction <add>, %57, %cst_24 [1] : vector<16x16xf32> to vector<16xf32>
    %59 = vector.shape_cast %58 : vector<16xf32> to vector<16x1xf32>
    %60 = tpu.reciprocal %59 {approx = true} : vector<16x1xf32> -> vector<16x1xf32>
    %61 = vector.broadcast %60 : vector<16x1xf32> to vector<16x16xf32>
    %62 = arith.mulf %57, %61 : vector<16x16xf32>
    "tpu.trace_start"() <{level = 10 : i32, message = "nm,md->nd"}> : () -> ()
    %cst_25 = arith.constant dense<0.000000e+00> : vector<16x32xf32>
    %63 = tpu.matmul %62, %46, %cst_25 {dimension_numbers = #tpu.dot_dimension_numbers<[1], [0], [0], [1], [0, 0, 1, 1], [], []>} : vector<16x16xf32>, vector<16x32xf32>, vector<16x32xf32> -> vector<16x32xf32>
    "tpu.trace_stop"() : () -> ()
    %64 = vector.extract_strided_slice %3 {offsets = [0, 96], sizes = [16, 32], strides = [1, 1]} : vector<16x768xf32> to vector<16x32xf32>
    %65 = vector.extract_strided_slice %3 {offsets = [0, 352], sizes = [16, 32], strides = [1, 1]} : vector<16x768xf32> to vector<16x32xf32>
    %66 = vector.extract_strided_slice %3 {offsets = [0, 608], sizes = [16, 32], strides = [1, 1]} : vector<16x768xf32> to vector<16x32xf32>
    %cst_26 = arith.constant 0.176776692 : f32
    %67 = vector.broadcast %cst_26 : f32 to vector<16x32xf32>
    %68 = arith.mulf %64, %67 : vector<16x32xf32>
    "tpu.trace_start"() <{level = 10 : i32, message = "nd,md->nm"}> : () -> ()
    %cst_27 = arith.constant dense<0.000000e+00> : vector<16x16xf32>
    %69 = tpu.matmul %68, %65, %cst_27 {dimension_numbers = #tpu.dot_dimension_numbers<[1], [1], [0], [0], [0, 0, 1, 0], [], []>} : vector<16x32xf32>, vector<16x32xf32>, vector<16x16xf32> -> vector<16x16xf32>
    "tpu.trace_stop"() : () -> ()
    %c3 = arith.constant 3 : index
    %c0_28 = arith.constant 0 : index
    %c0_29 = arith.constant 0 : index
    %70 = vector.load %arg3[%c3, %c0_28, %c0_29] : memref<8x16x16xf32, #tpu.memory_space<vmem>>, vector<1x16x16xf32>
    %71 = vector.shape_cast %70 : vector<1x16x16xf32> to vector<16x16xf32>
    %72 = arith.addf %69, %71 : vector<16x16xf32>
    %cst_30 = arith.constant dense<0xFF800000> : vector<16xf32>
    %73 = vector.multi_reduction <maximumf>, %72, %cst_30 [1] : vector<16x16xf32> to vector<16xf32>
    %74 = vector.shape_cast %73 : vector<16xf32> to vector<16x1xf32>
    %75 = vector.broadcast %74 : vector<16x1xf32> to vector<16x16xf32>
    %76 = arith.subf %72, %75 : vector<16x16xf32>
    %77 = math.exp %76 : vector<16x16xf32>
    %cst_31 = arith.constant dense<0.000000e+00> : vector<16xf32>
    %78 = vector.multi_reduction <add>, %77, %cst_31 [1] : vector<16x16xf32> to vector<16xf32>
    %79 = vector.shape_cast %78 : vector<16xf32> to vector<16x1xf32>
    %80 = tpu.reciprocal %79 {approx = true} : vector<16x1xf32> -> vector<16x1xf32>
    %81 = vector.broadcast %80 : vector<16x1xf32> to vector<16x16xf32>
    %82 = arith.mulf %77, %81 : vector<16x16xf32>
    "tpu.trace_start"() <{level = 10 : i32, message = "nm,md->nd"}> : () -> ()
    %cst_32 = arith.constant dense<0.000000e+00> : vector<16x32xf32>
    %83 = tpu.matmul %82, %66, %cst_32 {dimension_numbers = #tpu.dot_dimension_numbers<[1], [0], [0], [1], [0, 0, 1, 1], [], []>} : vector<16x16xf32>, vector<16x32xf32>, vector<16x32xf32> -> vector<16x32xf32>
    "tpu.trace_stop"() : () -> ()
    %84 = vector.extract_strided_slice %3 {offsets = [0, 128], sizes = [16, 32], strides = [1, 1]} : vector<16x768xf32> to vector<16x32xf32>
    %85 = vector.extract_strided_slice %3 {offsets = [0, 384], sizes = [16, 32], strides = [1, 1]} : vector<16x768xf32> to vector<16x32xf32>
    %86 = vector.extract_strided_slice %3 {offsets = [0, 640], sizes = [16, 32], strides = [1, 1]} : vector<16x768xf32> to vector<16x32xf32>
    %cst_33 = arith.constant 0.176776692 : f32
    %87 = vector.broadcast %cst_33 : f32 to vector<16x32xf32>
    %88 = arith.mulf %84, %87 : vector<16x32xf32>
    "tpu.trace_start"() <{level = 10 : i32, message = "nd,md->nm"}> : () -> ()
    %cst_34 = arith.constant dense<0.000000e+00> : vector<16x16xf32>
    %89 = tpu.matmul %88, %85, %cst_34 {dimension_numbers = #tpu.dot_dimension_numbers<[1], [1], [0], [0], [0, 0, 1, 0], [], []>} : vector<16x32xf32>, vector<16x32xf32>, vector<16x16xf32> -> vector<16x16xf32>
    "tpu.trace_stop"() : () -> ()
    %c4 = arith.constant 4 : index
    %c0_35 = arith.constant 0 : index
    %c0_36 = arith.constant 0 : index
    %90 = vector.load %arg3[%c4, %c0_35, %c0_36] : memref<8x16x16xf32, #tpu.memory_space<vmem>>, vector<1x16x16xf32>
    %91 = vector.shape_cast %90 : vector<1x16x16xf32> to vector<16x16xf32>
    %92 = arith.addf %89, %91 : vector<16x16xf32>
    %cst_37 = arith.constant dense<0xFF800000> : vector<16xf32>
    %93 = vector.multi_reduction <maximumf>, %92, %cst_37 [1] : vector<16x16xf32> to vector<16xf32>
    %94 = vector.shape_cast %93 : vector<16xf32> to vector<16x1xf32>
    %95 = vector.broadcast %94 : vector<16x1xf32> to vector<16x16xf32>
    %96 = arith.subf %92, %95 : vector<16x16xf32>
    %97 = math.exp %96 : vector<16x16xf32>
    %cst_38 = arith.constant dense<0.000000e+00> : vector<16xf32>
    %98 = vector.multi_reduction <add>, %97, %cst_38 [1] : vector<16x16xf32> to vector<16xf32>
    %99 = vector.shape_cast %98 : vector<16xf32> to vector<16x1xf32>
    %100 = tpu.reciprocal %99 {approx = true} : vector<16x1xf32> -> vector<16x1xf32>
    %101 = vector.broadcast %100 : vector<16x1xf32> to vector<16x16xf32>
    %102 = arith.mulf %97, %101 : vector<16x16xf32>
    "tpu.trace_start"() <{level = 10 : i32, message = "nm,md->nd"}> : () -> ()
    %cst_39 = arith.constant dense<0.000000e+00> : vector<16x32xf32>
    %103 = tpu.matmul %102, %86, %cst_39 {dimension_numbers = #tpu.dot_dimension_numbers<[1], [0], [0], [1], [0, 0, 1, 1], [], []>} : vector<16x16xf32>, vector<16x32xf32>, vector<16x32xf32> -> vector<16x32xf32>
    "tpu.trace_stop"() : () -> ()
    %104 = vector.extract_strided_slice %3 {offsets = [0, 160], sizes = [16, 32], strides = [1, 1]} : vector<16x768xf32> to vector<16x32xf32>
    %105 = vector.extract_strided_slice %3 {offsets = [0, 416], sizes = [16, 32], strides = [1, 1]} : vector<16x768xf32> to vector<16x32xf32>
    %106 = vector.extract_strided_slice %3 {offsets = [0, 672], sizes = [16, 32], strides = [1, 1]} : vector<16x768xf32> to vector<16x32xf32>
    %cst_40 = arith.constant 0.176776692 : f32
    %107 = vector.broadcast %cst_40 : f32 to vector<16x32xf32>
    %108 = arith.mulf %104, %107 : vector<16x32xf32>
    "tpu.trace_start"() <{level = 10 : i32, message = "nd,md->nm"}> : () -> ()
    %cst_41 = arith.constant dense<0.000000e+00> : vector<16x16xf32>
    %109 = tpu.matmul %108, %105, %cst_41 {dimension_numbers = #tpu.dot_dimension_numbers<[1], [1], [0], [0], [0, 0, 1, 0], [], []>} : vector<16x32xf32>, vector<16x32xf32>, vector<16x16xf32> -> vector<16x16xf32>
    "tpu.trace_stop"() : () -> ()
    %c5 = arith.constant 5 : index
    %c0_42 = arith.constant 0 : index
    %c0_43 = arith.constant 0 : index
    %110 = vector.load %arg3[%c5, %c0_42, %c0_43] : memref<8x16x16xf32, #tpu.memory_space<vmem>>, vector<1x16x16xf32>
    %111 = vector.shape_cast %110 : vector<1x16x16xf32> to vector<16x16xf32>
    %112 = arith.addf %109, %111 : vector<16x16xf32>
    %cst_44 = arith.constant dense<0xFF800000> : vector<16xf32>
    %113 = vector.multi_reduction <maximumf>, %112, %cst_44 [1] : vector<16x16xf32> to vector<16xf32>
    %114 = vector.shape_cast %113 : vector<16xf32> to vector<16x1xf32>
    %115 = vector.broadcast %114 : vector<16x1xf32> to vector<16x16xf32>
    %116 = arith.subf %112, %115 : vector<16x16xf32>
    %117 = math.exp %116 : vector<16x16xf32>
    %cst_45 = arith.constant dense<0.000000e+00> : vector<16xf32>
    %118 = vector.multi_reduction <add>, %117, %cst_45 [1] : vector<16x16xf32> to vector<16xf32>
    %119 = vector.shape_cast %118 : vector<16xf32> to vector<16x1xf32>
    %120 = tpu.reciprocal %119 {approx = true} : vector<16x1xf32> -> vector<16x1xf32>
    %121 = vector.broadcast %120 : vector<16x1xf32> to vector<16x16xf32>
    %122 = arith.mulf %117, %121 : vector<16x16xf32>
    "tpu.trace_start"() <{level = 10 : i32, message = "nm,md->nd"}> : () -> ()
    %cst_46 = arith.constant dense<0.000000e+00> : vector<16x32xf32>
    %123 = tpu.matmul %122, %106, %cst_46 {dimension_numbers = #tpu.dot_dimension_numbers<[1], [0], [0], [1], [0, 0, 1, 1], [], []>} : vector<16x16xf32>, vector<16x32xf32>, vector<16x32xf32> -> vector<16x32xf32>
    "tpu.trace_stop"() : () -> ()
    %124 = vector.extract_strided_slice %3 {offsets = [0, 192], sizes = [16, 32], strides = [1, 1]} : vector<16x768xf32> to vector<16x32xf32>
    %125 = vector.extract_strided_slice %3 {offsets = [0, 448], sizes = [16, 32], strides = [1, 1]} : vector<16x768xf32> to vector<16x32xf32>
    %126 = vector.extract_strided_slice %3 {offsets = [0, 704], sizes = [16, 32], strides = [1, 1]} : vector<16x768xf32> to vector<16x32xf32>
    %cst_47 = arith.constant 0.176776692 : f32
    %127 = vector.broadcast %cst_47 : f32 to vector<16x32xf32>
    %128 = arith.mulf %124, %127 : vector<16x32xf32>
    "tpu.trace_start"() <{level = 10 : i32, message = "nd,md->nm"}> : () -> ()
    %cst_48 = arith.constant dense<0.000000e+00> : vector<16x16xf32>
    %129 = tpu.matmul %128, %125, %cst_48 {dimension_numbers = #tpu.dot_dimension_numbers<[1], [1], [0], [0], [0, 0, 1, 0], [], []>} : vector<16x32xf32>, vector<16x32xf32>, vector<16x16xf32> -> vector<16x16xf32>
    "tpu.trace_stop"() : () -> ()
    %c6 = arith.constant 6 : index
    %c0_49 = arith.constant 0 : index
    %c0_50 = arith.constant 0 : index
    %130 = vector.load %arg3[%c6, %c0_49, %c0_50] : memref<8x16x16xf32, #tpu.memory_space<vmem>>, vector<1x16x16xf32>
    %131 = vector.shape_cast %130 : vector<1x16x16xf32> to vector<16x16xf32>
    %132 = arith.addf %129, %131 : vector<16x16xf32>
    %cst_51 = arith.constant dense<0xFF800000> : vector<16xf32>
    %133 = vector.multi_reduction <maximumf>, %132, %cst_51 [1] : vector<16x16xf32> to vector<16xf32>
    %134 = vector.shape_cast %133 : vector<16xf32> to vector<16x1xf32>
    %135 = vector.broadcast %134 : vector<16x1xf32> to vector<16x16xf32>
    %136 = arith.subf %132, %135 : vector<16x16xf32>
    %137 = math.exp %136 : vector<16x16xf32>
    %cst_52 = arith.constant dense<0.000000e+00> : vector<16xf32>
    %138 = vector.multi_reduction <add>, %137, %cst_52 [1] : vector<16x16xf32> to vector<16xf32>
    %139 = vector.shape_cast %138 : vector<16xf32> to vector<16x1xf32>
    %140 = tpu.reciprocal %139 {approx = true} : vector<16x1xf32> -> vector<16x1xf32>
    %141 = vector.broadcast %140 : vector<16x1xf32> to vector<16x16xf32>
    %142 = arith.mulf %137, %141 : vector<16x16xf32>
    "tpu.trace_start"() <{level = 10 : i32, message = "nm,md->nd"}> : () -> ()
    %cst_53 = arith.constant dense<0.000000e+00> : vector<16x32xf32>
    %143 = tpu.matmul %142, %126, %cst_53 {dimension_numbers = #tpu.dot_dimension_numbers<[1], [0], [0], [1], [0, 0, 1, 1], [], []>} : vector<16x16xf32>, vector<16x32xf32>, vector<16x32xf32> -> vector<16x32xf32>
    "tpu.trace_stop"() : () -> ()
    %144 = vector.extract_strided_slice %3 {offsets = [0, 224], sizes = [16, 32], strides = [1, 1]} : vector<16x768xf32> to vector<16x32xf32>
    %145 = vector.extract_strided_slice %3 {offsets = [0, 480], sizes = [16, 32], strides = [1, 1]} : vector<16x768xf32> to vector<16x32xf32>
    %146 = vector.extract_strided_slice %3 {offsets = [0, 736], sizes = [16, 32], strides = [1, 1]} : vector<16x768xf32> to vector<16x32xf32>
    %cst_54 = arith.constant 0.176776692 : f32
    %147 = vector.broadcast %cst_54 : f32 to vector<16x32xf32>
    %148 = arith.mulf %144, %147 : vector<16x32xf32>
    "tpu.trace_start"() <{level = 10 : i32, message = "nd,md->nm"}> : () -> ()
    %cst_55 = arith.constant dense<0.000000e+00> : vector<16x16xf32>
    %149 = tpu.matmul %148, %145, %cst_55 {dimension_numbers = #tpu.dot_dimension_numbers<[1], [1], [0], [0], [0, 0, 1, 0], [], []>} : vector<16x32xf32>, vector<16x32xf32>, vector<16x16xf32> -> vector<16x16xf32>
    "tpu.trace_stop"() : () -> ()
    %c7 = arith.constant 7 : index
    %c0_56 = arith.constant 0 : index
    %c0_57 = arith.constant 0 : index
    %150 = vector.load %arg3[%c7, %c0_56, %c0_57] : memref<8x16x16xf32, #tpu.memory_space<vmem>>, vector<1x16x16xf32>
    %151 = vector.shape_cast %150 : vector<1x16x16xf32> to vector<16x16xf32>
    %152 = arith.addf %149, %151 : vector<16x16xf32>
    %cst_58 = arith.constant dense<0xFF800000> : vector<16xf32>
    %153 = vector.multi_reduction <maximumf>, %152, %cst_58 [1] : vector<16x16xf32> to vector<16xf32>
    %154 = vector.shape_cast %153 : vector<16xf32> to vector<16x1xf32>
    %155 = vector.broadcast %154 : vector<16x1xf32> to vector<16x16xf32>
    %156 = arith.subf %152, %155 : vector<16x16xf32>
    %157 = math.exp %156 : vector<16x16xf32>
    %cst_59 = arith.constant dense<0.000000e+00> : vector<16xf32>
    %158 = vector.multi_reduction <add>, %157, %cst_59 [1] : vector<16x16xf32> to vector<16xf32>
    %159 = vector.shape_cast %158 : vector<16xf32> to vector<16x1xf32>
    %160 = tpu.reciprocal %159 {approx = true} : vector<16x1xf32> -> vector<16x1xf32>
    %161 = vector.broadcast %160 : vector<16x1xf32> to vector<16x16xf32>
    %162 = arith.mulf %157, %161 : vector<16x16xf32>
    "tpu.trace_start"() <{level = 10 : i32, message = "nm,md->nd"}> : () -> ()
    %cst_60 = arith.constant dense<0.000000e+00> : vector<16x32xf32>
    %163 = tpu.matmul %162, %146, %cst_60 {dimension_numbers = #tpu.dot_dimension_numbers<[1], [0], [0], [1], [0, 0, 1, 1], [], []>} : vector<16x16xf32>, vector<16x32xf32>, vector<16x32xf32> -> vector<16x32xf32>
    "tpu.trace_stop"() : () -> ()
    %164 = tpu.concatenate %23, %43, %63, %83, %103, %123, %143, %163 in 1 : vector<16x32xf32>, vector<16x32xf32>, vector<16x32xf32>, vector<16x32xf32>, vector<16x32xf32>, vector<16x32xf32>, vector<16x32xf32>, vector<16x32xf32> -> vector<16x256xf32>
    %c0_61 = arith.constant 0 : index
    %c0_62 = arith.constant 0 : index
    %165 = vector.load %arg4[%c0_61, %c0_62] : memref<256x32xf32, #tpu.memory_space<vmem>>, vector<256x32xf32>
    %cst_63 = arith.constant dense<0.000000e+00> : vector<16x32xf32>
    %166 = tpu.matmul %164, %165, %cst_63 {dimension_numbers = #tpu.dot_dimension_numbers<[1], [0], [0], [1], [0, 0, 1, 1], [], []>} : vector<16x256xf32>, vector<256x32xf32>, vector<16x32xf32> -> vector<16x32xf32>
    %c0_64 = arith.constant 0 : index
    %c0_65 = arith.constant 0 : index
    %167 = vector.load %arg5[%c0_64, %c0_65] : memref<1x32xf32, #tpu.memory_space<vmem>>, vector<1x32xf32>
    %168 = vector.broadcast %167 : vector<1x32xf32> to vector<16x32xf32>
    %169 = arith.addf %166, %168 : vector<16x32xf32>
    %c0_66 = arith.constant 0 : index
    %c0_67 = arith.constant 0 : index
    %c0_68 = arith.constant 0 : index
    %170 = vector.load %arg6[%c0_66, %c0_67, %c0_68] : memref<1x16x32xf32, #tpu.memory_space<vmem>>, vector<1x16x32xf32>
    %171 = vector.shape_cast %170 : vector<1x16x32xf32> to vector<16x32xf32>
    %172 = vector.shape_cast %169 : vector<16x32xf32> to vector<1x16x32xf32>
    tpu.vector_store %arg6[%c0_66, %c0_67, %c0_68], %172 {strides = array<i32>} : memref<1x16x32xf32, #tpu.memory_space<vmem>>, vector<1x16x32xf32>,
    return
  }
  func.func @transform_0(%arg0: i32) -> (i32, i32, i32) {
    %c0_i32 = arith.constant 0 : i32
    %c0_i32_0 = arith.constant 0 : i32
    %c0_i32_1 = arith.constant 0 : i32
    return %arg0, %c0_i32, %c0_i32_0 : i32, i32, i32
  }
  func.func @transform_1(%arg0: i32) -> (i32, i32) {
    %c0_i32 = arith.constant 0 : i32
    %c0_i32_0 = arith.constant 0 : i32
    %c0_i32_1 = arith.constant 0 : i32
    return %c0_i32, %c0_i32_0 : i32, i32
  }
  func.func @transform_2(%arg0: i32) -> (i32, i32, i32) {
    %c0_i32 = arith.constant 0 : i32
    %c0_i32_0 = arith.constant 0 : i32
    %c0_i32_1 = arith.constant 0 : i32
    %c0_i32_2 = arith.constant 0 : i32
    return %c0_i32, %c0_i32_0, %c0_i32_1 : i32, i32, i32
  }
  func.func @transform_3(%arg0: i32) -> (i32, i32) {
    %c0_i32 = arith.constant 0 : i32
    %c0_i32_0 = arith.constant 0 : i32
    %c0_i32_1 = arith.constant 0 : i32
    return %c0_i32, %c0_i32_0 : i32, i32
  }
  func.func @transform_4(%arg0: i32) -> (i32, i32) {
    %c0_i32 = arith.constant 0 : i32
    %c0_i32_0 = arith.constant 0 : i32
    %c0_i32_1 = arith.constant 0 : i32
    return %c0_i32, %c0_i32_0 : i32, i32
  }
  func.func @transform_5(%arg0: i32) -> (i32, i32, i32) {
    %c0_i32 = arith.constant 0 : i32
    %c0_i32_0 = arith.constant 0 : i32
    %c0_i32_1 = arith.constant 0 : i32
    return %arg0, %c0_i32, %c0_i32_0 : i32, i32, i32
  }
}

</mosaic_0001>

<bundles_post_ra>
// kernel: attention_forward.1
= control target key start
LH: loop header
LB: loop body
LE: loop exit
PB: predicated region body
PF: predicated region fallthrough
CT: control target
= control target key end

     0   :  { %10 = vsyncpa [#allocation3], 0  ;;  %s3492_s0 = inlined_call_operand.vmem [shape: f32[2,16,32], index: 0, kind: input, shape index: {}]   ;;  %s3493_s1 = inlined_call_operand.vmem [shape: f32[32,768], index: 1, kind: input, shape index: {}]   ;;  %s3494_s2 = inlined_call_operand.vmem [shape: f32[8,16,16], index: 2, kind: input, shape index: {}]   ;;  %s3495_s3 = inlined_call_operand.vmem [shape: f32[256,32], index: 3, kind: input, shape index: {}]   ;;  %s3496_s4 = inlined_call_operand.vmem [shape: f32[1,32], index: 4, kind: input, shape index: {}]   ;;  %s3497_s5 = inlined_call_operand.hbm [shape: f32[2,16,32], index: 5, kind: output, shape index: {}]  }
   0x1   :  { %12 = vsyncpa [#allocation3 + $0x1], 0  ;;  %s2888_s18 = smov 0   ;;  %s2890_s19 = smov 0  }
   0x2   :  { %s2892_s20 = smov 0   ;;  %s2894_s21 = smov 0  }
   0x3 LB: > { %s2909_s22 = sadd.s32 4294967295, %s2849_s21   ;;  %s2353_s23 = sadd.s32 4294967294, %s2849_s21   ;;  %s2849_s21 = sphi %s2894_s21, %s3503_s21   ;;  %s2845_s20 = sphi %s2892_s20, %s3502_s20   ;;  %s2841_s19 = sphi %s2890_s19, %s3501_s19   ;;  %s2837_s18 = sphi %s2888_s18, %s3500_s18  }
   0x4   : > { %s2913_s24 = sadd.s32 1, %s2849_s21   ;;  %s135_s25 = sadd.s32 1, %s2845_s20 }
   0x5   : > { %s132_s26 = ssub.s32 %s2849_s21, %s2913_s24  ;;  %p145_p0 = scmp.ne.s32.totalorder %s2845_s20, %s2841_s19 }
   0x6   : > { %p133_p1 = scmp.eq.s32.totalorder %s132_s26, 0  ;;  %p146_p2 = scmp.eq.s32.totalorder %s2909_s22, 1 }
   0x7   : > { %p151_p3 = scmp.ne.s32.totalorder %s2841_s19, %s2837_s18  ;;  %p152_p4 = scmp.eq.s32.totalorder %s2353_s23, 1 }
   0x8   : > { %s2924_s27 = scalar_select %p133_p1, %s2845_s20, %s135_s25  }
   0x9   : > { %p2926_p5 = por %p146_p2, %p145_p0  ;;  %p2930_p6 = por %p152_p4, %p151_p3 }
   0xa   : > { %p2356_p7 = scmp.ge.s32.totalorder %s2849_s21, 1  ;;  %p190_p8 = scmp.lt.s32.totalorder %s2849_s21, 3 }
   0xc   : > { %p191_p9 = pnand %p2356_p7, %p190_p8 }
   0xd   : > { %p218_p10 = scmp.lt.s32.totalorder (!%p191_p9), %s2909_s22, 1  ;;  %s2853_s11 = smov (!%p191_p9), 64  }
   0xe   : > { %194 = sbr.rel (%p191_p9) target bundleno = 4051 (0xfd3), region = 40  ;;  %s2854_s8 = smov (!%p191_p9), 32  }
   0xf   : > { %s2435_s16 = sshll.u32 (!%p191_p9), %s2909_s22, 8 }
  0x10   : > { %s3447_s25 = scalar_lea.hbm (!%p191_p9), %s3497_s5, %s2435_s16 }
  0x13   : > { %v244_v0 = vld [vmem:[%s3493_s1 + $0x98] sm:$0xff]  ;;  %v243_v1 = vld [vmem:[%s3493_s1 + $0x90] sm:$0xff]  ;;  %v238_v2 = vld [vmem:[%s3493_s1 + $0x68] sm:$0xff]  ;;  %v2851_v4 = vmov 0.0   ;;  %s219_s15 = scalar_select %p218_p10, %s2909_s22, 1  ;;  %vm249_vm0 = vcmask 261120  }
  0x14   : > { %280 = vmatprep.subr.mxu1 %v244_v0  ;;  %v237_v3 = vld [vmem:[%s3493_s1 + $0x60] sm:$0xff]  ;;  %320 = vmatprep.mubr.f32.mxu1 %v2851_v4  ;;  %v232_v5 = vld [vmem:[%s3493_s1 + $0x38] sm:$0xff]  ;;  %v231_v6 = vld [vmem:[%s3493_s1 + $0x30] sm:$0xff]  ;;  %vm578_vm1 = vcmask 130048   ;;  %vm2149_vm2 = vcmask 523264   ;;  %vm2152_vm3 = vcmask 785408  }
  0x15   : > { %281 = vmatpush1.msra.mxu1 %v243_v1  ;;  %v226_v7 = vld [vmem:[%s3493_s1 + $0x8] sm:$0xff]  ;;  %s2434_s26 = sshll.u32 %s219_s15, 4  ;;  %v225_v8 = vld [vmem:[%s3493_s1] sm:$0xff]  ;;  %v240_v12 = vld [vmem:[%s3493_s1 + $0x78] sm:$0xff] }
  0x16   : > { %282 = vmatprep.subr.mxu1 %v238_v2  ;;  %s222_s9 = scalar_lea.vmem %s3492_s0, %s2434_s26  ;;  %v246_v10 = vld [vmem:[%s3493_s1 + $0xa8] sm:$0xff]  ;;  %v245_v11 = vld [vmem:[%s3493_s1 + $0xa0] sm:$0xff]  ;;  %v239_v13 = vld [vmem:[%s3493_s1 + $0x70] sm:$0xff]  ;;  %s2855_s26 = smov [#allocation2]  }
  0x17   : > { %283 = vmatpush1.msra.mxu1 %v237_v3  ;;  %v223_v9 = vld [vmem:[%s222_s9] sm:$0xff]  ;;  %v224_v14 = vld [vmem:[%s222_s9 + $0x8] sm:$0xff]  ;;  %v228_v17 = vld [vmem:[%s3493_s1 + $0x18] sm:$0xff]  ;;  %s2852_s9 = smov 96   ;;  %s2793_s30 = sshll.u32 %s2855_s26, 4  ;;  %s2794_s30 = int_to_ptr.vmem [resolvable:$false] %s2793_s30 }
  0x18   : > { %284 = vmatprep.subr.mxu1 %v232_v5  ;;  %v234_v15 = vld [vmem:[%s3493_s1 + $0x48] sm:$0xff]  ;;  %v233_v16 = vld [vmem:[%s3493_s1 + $0x40] sm:$0xff]  ;;  %v227_v18 = vld [vmem:[%s3493_s1 + $0x10] sm:$0xff]  ;;  %s2795_s6 = scalar_lea.vmem %s2794_s30, 512 }
  0x19   : > { %285 = vmatpush1.msra.mxu1 %v231_v6  ;;  %v248_v19 = vld [vmem:[%s3493_s1 + $0xb8] sm:$0xff]  ;;  %v247_v20 = vld [vmem:[%s3493_s1 + $0xb0] sm:$0xff]  ;;  %v242_v21 = vld [vmem:[%s3493_s1 + $0x88] sm:$0xff] }
  0x1a   : > { %286 = vmatprep.subr.mxu1 %v226_v7  ;;  %v241_v22 = vld [vmem:[%s3493_s1 + $0x80] sm:$0xff]  ;;  %v236_v23 = vld [vmem:[%s3493_s1 + $0x58] sm:$0xff]  ;;  %v235_v24 = vld [vmem:[%s3493_s1 + $0x50] sm:$0xff] }
  0x1b   : > { %287 = vmatpush1.msra.mxu1 %v225_v8  ;;  %v230_v25 = vld [vmem:[%s3493_s1 + $0x28] sm:$0xff]  ;;  %v229_v26 = vld [vmem:[%s3493_s1 + $0x20] sm:$0xff]  ;;  %v2372_v58 = vld [vmem:[%s3494_s2 + $0x10] sm:$0xff] }
  0x1c   : > { %2360 = vmatmul.mubr.msk.f32.vlgmr.msra.gmra.mxu1 %vm249_vm0, %v223_v9  ;;  %357 = vmatprep.subr.mxu1 %v246_v10  ;;  %v490_v49 = vld [vmem:[%s3494_s2 + $0x8] sm:$0xff]  ;;  %v489_v51 = vld [vmem:[%s3494_s2] sm:$0xff]  ;;  %v2373_v59 = vld [vmem:[%s3494_s2 + $0x18] sm:$0xff] }
  0x1d   : > { %358 = vmatpush1.msra.mxu1 %v245_v11  ;;  %326 = vmatprep.mubr.f32.mxu1 %v2851_v4  ;;  %v2381_v0 = vld [vmem:[%s3494_s2 + $0x28] sm:$0xff]  ;;  %v2380_v2 = vld [vmem:[%s3494_s2 + $0x20] sm:$0xff] }
  0x1e   : > { %359 = vmatprep.subr.mxu1 %v240_v12 }
  0x1f   : > { %360 = vmatpush1.msra.mxu1 %v239_v13 }
  0x20   : > { %2361 = vmatmul.mubr.msk.f32.gmra.mxu1 %vm249_vm0, %v224_v14  ;;  %361 = vmatprep.subr.mxu1 %v234_v15 }
  0x21   : > { %362 = vmatpush1.msra.mxu1 %v233_v16  ;;  %397 = vmatprep.mubr.f32.mxu1 %v2851_v4 }
  0x22   : > { %363 = vmatprep.subr.mxu1 %v228_v17 }
  0x23   : > { %364 = vmatpush1.msra.mxu1 %v227_v18 }
  0x24   : > { %2362 = vmatmul.mubr.msk.f32.vlgmr.msra.gmra.mxu1 %vm249_vm0, %v223_v9  ;;  %434 = vmatprep.subr.mxu1 %v248_v19 }
  0x25   : > { %403 = vmatprep.mubr.f32.mxu1 %v2851_v4  ;;  %435 = vmatpush1.msra.mxu1 %v247_v20 }
  0x26   : > { %436 = vmatprep.subr.mxu1 %v242_v21 }
  0x27   : > { %437 = vmatpush1.msra.mxu1 %v241_v22 }
  0x28   : > { %2363 = vmatmul.mubr.msk.f32.gmra.mxu1 %vm249_vm0, %v224_v14  ;;  %438 = vmatprep.subr.mxu1 %v236_v23 }
  0x29   : > { %439 = vmatpush1.msra.mxu1 %v235_v24  ;;  %474 = vmatprep.mubr.f32.mxu1 %v2851_v4 }
  0x2a   : > { %440 = vmatprep.subr.mxu1 %v230_v25 }
  0x2b   : > { %441 = vmatpush1.msra.mxu1 %v229_v26 }
  0x2c   : > { %2364 = vmatmul.mubr.msk.f32.vlgmr.msra.gmra.mxu1 %vm249_vm0, %v223_v9 }
  0x2d   : > { %480 = vmatprep.mubr.f32.mxu1 %v2851_v4 }
  0x30   : > { %2365 = vmatmul.mubr.msk.f32.gmra.mxu1 %vm249_vm0, %v224_v14 }
  0xdc   : > { %v322_v27 = vpop.f32.mrf.mxu1 }
  0xdd   : > { %v3019_v28 = vmul.f32 0.17677669, %v322_v27 }
  0xde   : > { %v3021_v29 = vpop.f32.mrf.mxu1 }
  0xdf   : > { %685 = vrot.lane.b32.xlu1 %v3019_v28, %s2852_s9  ;;  %2542 = vmatprep.mubr.msk.f32.mxu1 %vm249_vm0, %v3019_v28 }
  0xe0   : > { %v328_v30 = vpop.f32.mrf.mxu1 }
  0xe1   : > { %v3055_v38 = vmul.f32 0.17677669, %v328_v30 }
  0xe2   : > { %v3027_v31 = vpop.f32.mrf.mxu1 }
  0xe4   : > { %v3029_v32 = vpop.f32.mrf.mxu1 }
  0xe6   : > { %v3031_v33 = vpop.f32.mrf.mxu1 }
  0xe8   : > { %v3033_v34 = vpop.f32.mrf.mxu1 }
  0xe9   : > { %896 = vrot.lane.b32.xlu1 %v3033_v34, %s2853_s11  ;;  %691 = vrot.lane.b32.xlu0 %v3033_v34, %s2852_s9 }
  0xea   : > { %2538 = vmatprep.subr.msk.mxu1 %vm249_vm0, %v3033_v34  ;;  %v3041_v35 = vpop.f32.mrf.mxu1 }
  0xeb   : > { %2539 = vmatpush3.xpose.msk.msra.mxu1 %vm249_vm0, %v3033_v34 }
  0xec   : > { %2540 = vmatprep.subr.msk.mxu1 %vm249_vm0, %v3029_v32  ;;  %v3047_v36 = vpop.f32.mrf.mxu1 }
  0xed   : > { %894 = vrot.lane.b32.xlu1 %v3029_v32, %s2853_s11  ;;  %689 = vrot.lane.b32.xlu0 %v3029_v32, %s2852_s9 }
  0xee   : > { %v3053_v37 = vpop.f32.mrf.mxu1 }
  0xef   : > { %2541 = vmatpush3.xpose.msk.msra.mxu1 %vm249_vm0, %v3029_v32 }
  0xf0   : > { %v3063_v39 = vpop.f32.mrf.mxu1 }
  0xf1   : > { %892 = vrot.lane.b32.xlu1 %v3055_v38, %s2853_s11  ;;  %687 = vrot.lane.b32.xlu0 %v3055_v38, %s2852_s9 }
  0xf2   : > { %2543 = vmatmul.mubr.msk.f32.vlgmr.msra.gmra.mxu1 %vm249_vm0, %v3055_v38  ;;  %2545 = vmatprep.subr.mxu1 %v3063_v39  ;;  %v3085_v48 = vpop.f32.mrf.mxu1 }
  0xf3   : > { %2546 = vmatpush3.msra.mxu1 %v3063_v39 }
  0xf4   : > { %2547 = vmatprep.subr.mxu1 %v3047_v36 }
  0xf5   : > { %890 = vrot.lane.b32.xlu0 %v3019_v28, %s2853_s11  ;;  %2548 = vmatpush3.msra.mxu1 %v3047_v36 }
 0x151   : > { %v686_v40 = vpop.permute.xlu1 %685 }
 0x152   : > { %2556 = vmatprep.mubr.msk.f32.mxu0 %vm249_vm0, %v686_v40 }
 0x15b   : > { %v692_v41 = vpop.permute.xlu0 %691  ;;  %v897_v42 = vpop.permute.xlu1 %896 }
 0x15c   : > { %2552 = vmatprep.subr.msk.mxu0 %vm249_vm0, %v692_v41 }
 0x15d   : > { %2553 = vmatpush3.xpose.msk.msra.mxu0 %vm249_vm0, %v692_v41 }
 0x15f   : > { %v690_v43 = vpop.permute.xlu0 %689  ;;  %v895_v45 = vpop.permute.xlu1 %894 }
 0x160   : > { %2554 = vmatprep.subr.msk.mxu0 %vm249_vm0, %v690_v43 }
 0x161   : > { %2555 = vmatpush3.xpose.msk.msra.mxu0 %vm249_vm0, %v690_v43 }
 0x162   : > { %2566 = vmatprep.subr.msk.mxu0 %vm249_vm0, %v897_v42 }
 0x163   : > { %v688_v44 = vpop.permute.xlu0 %687  ;;  %v893_v47 = vpop.permute.xlu1 %892 }
 0x164   : > { %2557 = vmatmul.mubr.msk.f32.vlgmr.msra.gmra.mxu0 %vm249_vm0, %v688_v44 }
 0x165   : > { %2567 = vmatpush3.xpose.msk.msra.mxu0 %vm249_vm0, %v897_v42 }
 0x166   : > { %2568 = vmatprep.subr.msk.mxu0 %vm249_vm0, %v895_v45 }
 0x167   : > { %v891_v46 = vpop.permute.xlu0 %890 }
 0x168   : > { %2570 = vmatprep.mubr.msk.f32.mxu0 %vm249_vm0, %v891_v46 }
 0x169   : > { %2569 = vmatpush3.xpose.msk.msra.mxu0 %vm249_vm0, %v895_v45 }
 0x16c   : > { %2571 = vmatmul.mubr.msk.f32.vlgmr.msra.gmra.mxu0 %vm249_vm0, %v893_v47 }
 0x1b2   : > { %v2544_v50 = vpop.f32.mrf.mxu1 }
 0x1b3   : > { %v575_v52 = vadd.f32 %v2544_v50, %v490_v49 }
 0x1b4   : > { %v569_v53 = vpop.f32.mrf.mxu1 }
 0x1b5   : > { %v570_v54 = vadd.f32 %v569_v53, %v489_v51  ;;  %v582_v55 = vsel %vm578_vm1, %v575_v52, -inf }
 0x1b6   : > { %583 = vmax.xlane.f32.xlu1 %v582_v55 }
 0x1b7   : > { %v579_v56 = vsel %vm578_vm1, %v570_v54, -inf }
 0x1b8   : > { %580 = vmax.xlane.f32.xlu0 %v579_v56 }
 0x1c7   : > { %802 = vrot.lane.b32.xlu1 %v3063_v39, %s2852_s9 }
 0x1cb   : > { %1005 = vrot.lane.b32.xlu1 %v3063_v39, %s2853_s11 }
 0x224   : > { %v2558_v57 = vpop.f32.mrf.mxu0 }
 0x225   : > { %v773_v62 = vadd.f32 %v2558_v57, %v2373_v59 }
 0x226   : > { %v767_v60 = vpop.f32.mrf.mxu0 }
 0x227   : > { %v768_v61 = vadd.f32 %v2372_v58, %v767_v60  ;;  %v779_v4 = vsel %vm578_vm1, %v773_v62, -inf }
 0x229   : > { %v776_v63 = vsel %vm578_vm1, %v768_v61, -inf }
 0x22a   : > { %777 = vmax.xlane.f32.xlu0 %v776_v63 }
 0x22c   : > { %v2572_v1 = vpop.f32.mrf.mxu0 }
 0x22d   : > { %v978_v3 = vadd.f32 %v2572_v1, %v2381_v0 }
 0x22e   : > { %v972_v5 = vpop.f32.mrf.mxu0  ;;  %780 = vmax.xlane.f32.xlu0 %v779_v4 }
 0x22f   : > { %v973_v6 = vadd.f32 %v2380_v2, %v972_v5  ;;  %v984_v8 = vsel %vm578_vm1, %v978_v3, -inf }
 0x231   : > { %v981_v7 = vsel %vm578_vm1, %v973_v6, -inf }
 0x232   : > { %982 = vmax.xlane.f32.xlu1 %v981_v7  ;;  %985 = vmax.xlane.f32.xlu0 %v984_v8 }
 0x23f   : > { %v584_v9 = vpop.xlane.xlu1 %583 }
 0x240   : > { %v586_v12 = vsub.f32 %v575_v52, %v584_v9 }
 0x241   : > { %v581_v11 = vpop.xlane.xlu0 %580 }
 0x242   : > { %v585_v13 = vsub.f32 %v570_v54, %v581_v11  ;;  %v589_v14 = vmul.f32 1.442695, %v586_v12 }
 0x243   : > { %1003 = vrot.lane.b32.xlu1 %v3047_v36, %s2853_s11  ;;  %v803_v10 = vpop.permute.xlu1 %802 }
 0x244   : > { %2559 = vmatprep.subr.mxu1 %v803_v10  ;;  %v587_v15 = vmul.f32 1.442695, %v585_v13  ;;  %2725 = vpow2.f32 %v589_v14 }
 0x246   : > { %2727 = vpow2.f32 %v587_v15  ;;  %v2389_v15 = vld [vmem:[%s3494_s2 + $0x38] sm:$0xff] }
 0x247   : > { %v1006_v46 = vpop.permute.xlu1 %1005 }
 0x248   : > { %800 = vrot.lane.b32.xlu0 %v3047_v36, %s2852_s9 }
 0x251   : > { %v2726_v16 = vpop.eup %2725 }
 0x252   : > { %v594_v18 = vsel %vm578_vm1, %v2726_v16, 0.0 }
 0x253   : > { %v2728_v17 = vpop.eup %2727 }
 0x254   : > { %v591_v19 = vsel %vm578_vm1, %v2728_v17, 0.0 }
 0x267   : > { %595 = vadd.xlane.f32.xlu0 %v594_v18  ;;  %592 = vadd.xlane.f32.xlu1 %v591_v19 }
 0x2b3   : > { %v778_v20 = vpop.xlane.xlu0 %777 }
 0x2b4   : > { %v782_v21 = vsub.f32 %v768_v61, %v778_v20 }
 0x2b6   : > { %v784_v22 = vmul.f32 1.442695, %v782_v21 }
 0x2b7   : > { %v781_v23 = vpop.xlane.xlu0 %780 }
 0x2b8   : > { %2729 = vpow2.f32 %v784_v22  ;;  %v783_v24 = vsub.f32 %v773_v62, %v781_v23 }
 0x2ba   : > { %v786_v25 = vmul.f32 1.442695, %v783_v24 }
 0x2bb   : > { %v986_v26 = vpop.xlane.xlu0 %985  ;;  %v983_v47 = vpop.xlane.xlu1 %982 }
 0x2bc   : > { %2731 = vpow2.f32 %v786_v25  ;;  %v988_v27 = vsub.f32 %v978_v3, %v986_v26  ;;  %v987_v49 = vsub.f32 %v973_v6, %v983_v47 }
 0x2be   : > { %v991_v30 = vmul.f32 1.442695, %v988_v27  ;;  %v989_v50 = vmul.f32 1.442695, %v987_v49 }
 0x2bf   : > { %v1004_v51 = vpop.permute.xlu1 %1003  ;;  %v801_v52 = vpop.permute.xlu0 %800 }
 0x2c0   : > { %2733 = vpow2.f32 %v991_v30 }
 0x2c1   : > { %2735 = vpow2.f32 %v989_v50 }
 0x2c5   : > { %v2730_v40 = vpop.eup %2729 }
 0x2c6   : > { %v788_v41 = vsel %vm578_vm1, %v2730_v40, 0.0 }
 0x2c7   : > { %789 = vadd.xlane.f32.xlu1 %v788_v41 }
 0x2c9   : > { %v2732_v42 = vpop.eup %2731 }
 0x2ca   : > { %v791_v43 = vsel %vm578_vm1, %v2732_v42, 0.0 }
 0x2cb   : > { %792 = vadd.xlane.f32.xlu0 %v791_v43 }
 0x2cd   : > { %v2734_v44 = vpop.eup %2733 }
 0x2ce   : > { %v996_v45 = vsel %vm578_vm1, %v2734_v44, 0.0  ;;  %v2736_v55 = vpop.eup %2735 }
 0x2cf   : > { %997 = vadd.xlane.f32.xlu0 %v996_v45 }
 0x2d8   : > { %1097 = vrot.lane.b32.xlu1 %v3029_v32, %s2854_s8  ;;  %v993_v32 = vsel %vm578_vm1, %v2736_v55, 0.0 }
 0x2e5   : > { %1099 = vrot.lane.b32.xlu0 %v3033_v34, %s2854_s8 }
 0x2e9   : > { %1093 = vrot.lane.b32.xlu0 %v3019_v28, %s2854_s8 }
 0x2f0   : > { %v593_v53 = vpop.xlane.xlu1 %592  ;;  %v596_v54 = vpop.xlane.xlu0 %595 }
 0x2f1   : > { %2737 = vrcp.f32 %v593_v53 }
 0x2f2   : > { %2739 = vrcp.f32 %v596_v54  ;;  %v2397_v54 = vld [vmem:[%s3494_s2 + $0x48] sm:$0xff] }
 0x2fc   : > { %994 = vadd.xlane.f32.xlu1 %v993_v32  ;;  %v2396_v32 = vld [vmem:[%s3494_s2 + $0x40] sm:$0xff] }
 0x2fe   : > { %v2738_v56 = vpop.eup %2737 }
 0x2ff   : > { %v2740_v57 = vpop.eup %2739  ;;  %v599_v58 = vmul.f32 %v2738_v56, %v2728_v17  ;;  %v2388_v17 = vld [vmem:[%s3494_s2 + $0x30] sm:$0xff] }
 0x300   : > { %v600_v59 = vmul.f32 %v2740_v57, %v2726_v16 }
 0x301   : > { %2549 = vmatprep.mubr.msk.f32.mxu1 %vm578_vm1, %v599_v58 }
 0x302   : > { %2550 = vmatmul.mubr.msk.f32.vlgmr.msra.gmra.mxu1 %vm578_vm1, %v600_v59 }
 0x303   : > { %2560 = vmatpush3.msra.mxu1 %v803_v10 }
 0x304   : > { %2561 = vmatprep.subr.mxu1 %v801_v52 }
 0x305   : > { %2562 = vmatpush3.msra.mxu1 %v801_v52  ;;  %v3178_v52 = vmul.f32 0.17677669, %v3021_v29 }
 0x306   : > { %2573 = vmatprep.subr.mxu1 %v1006_v46 }
 0x30d   : > { %1095 = vrot.lane.b32.xlu1 %v3055_v38, %s2854_s8 }
 0x350   : > { %v790_v28 = vpop.xlane.xlu1 %789 }
 0x351   : > { %2741 = vrcp.f32 %v790_v28 }
 0x354   : > { %v793_v34 = vpop.xlane.xlu0 %792  ;;  %v1098_v38 = vpop.permute.xlu1 %1097 }
 0x355   : > { %2743 = vrcp.f32 %v793_v34 }
 0x358   : > { %v998_v63 = vpop.xlane.xlu0 %997 }
 0x359   : > { %2745 = vrcp.f32 %v998_v63 }
 0x35c   : > { %v1100_v1 = vpop.permute.xlu0 %1099 }
 0x35e   : > { %v2742_v60 = vpop.eup %2741 }
 0x35f   : > { %v796_v61 = vmul.f32 %v2742_v60, %v2730_v40 }
 0x360   : > { %v1094_v7 = vpop.permute.xlu0 %1093 }
 0x361   : > { %2563 = vmatprep.mubr.msk.f32.mxu1 %vm578_vm1, %v796_v61 }
 0x362   : > { %v2744_v62 = vpop.eup %2743 }
 0x363   : > { %v797_v0 = vmul.f32 %v2744_v62, %v2732_v42 }
 0x365   : > { %2564 = vmatmul.mubr.msk.f32.vlgmr.msra.gmra.mxu1 %vm578_vm1, %v797_v0 }
 0x366   : > { %2574 = vmatpush3.msra.mxu1 %v1006_v46  ;;  %v2746_v3 = vpop.eup %2745 }
 0x367   : > { %2575 = vmatprep.subr.mxu1 %v1004_v51  ;;  %v1002_v6 = vmul.f32 %v2746_v3, %v2734_v44 }
 0x368   : > { %2576 = vmatpush3.msra.mxu1 %v1004_v51 }
 0x369   : > { %2580 = vmatprep.subr.msk.mxu1 %vm249_vm0, %v1100_v1 }
 0x385   : > { %v995_v2 = vpop.xlane.xlu1 %994 }
 0x386   : > { %2747 = vrcp.f32 %v995_v2 }
 0x389   : > { %v1096_v8 = vpop.permute.xlu1 %1095 }
 0x393   : > { %v2748_v4 = vpop.eup %2747 }
 0x394   : > { %v1001_v5 = vmul.f32 %v2748_v4, %v2736_v55 }
 0x396   : > { %2577 = vmatprep.mubr.msk.f32.mxu1 %vm578_vm1, %v1001_v5 }
 0x397   : > { %2578 = vmatmul.mubr.msk.f32.vlgmr.msra.gmra.mxu1 %vm578_vm1, %v1002_v6 }
 0x398   : > { %2581 = vmatpush3.xpose.msk.msra.mxu1 %vm249_vm0, %v1100_v1  ;;  %2584 = vmatprep.mubr.msk.f32.mxu1 %vm249_vm0, %v1094_v7 }
 0x399   : > { %2582 = vmatprep.subr.msk.mxu1 %vm249_vm0, %v1098_v38 }
 0x39c   : > { %2583 = vmatpush3.xpose.msk.msra.mxu1 %vm249_vm0, %v1098_v38 }
 0x39d   : > { %2601 = vmatprep.subr.mxu1 %v3085_v48 }
 0x39f   : > { %2585 = vmatmul.mubr.msk.f32.vlgmr.msra.gmra.mxu1 %vm249_vm0, %v1096_v8 }
 0x3a0   : > { %2602 = vmatpush3.msra.mxu1 %v3085_v48 }
 0x3a1   : > { %2603 = vmatprep.subr.mxu1 %v3053_v37 }
 0x3a2   : > { %2604 = vmatpush3.msra.mxu1 %v3053_v37 }
 0x3c2   : > { %v3149_v9 = vpop.f32.mrf.mxu1 }
 0x3c4   : > { %v3151_v10 = vpop.f32.mrf.mxu1 }
 0x425   : > { %v3153_v11 = vpop.f32.mrf.mxu1 }
 0x427   : > { %v3155_v12 = vpop.f32.mrf.mxu1 }
 0x457   : > { %v3157_v13 = vpop.f32.mrf.mxu1 }
 0x459   : > { %v3159_v14 = vpop.f32.mrf.mxu1 }
 0x45f   : > { %v2586_v16 = vpop.f32.mrf.mxu1 }
 0x460   : > { %v1181_v18 = vadd.f32 %v2586_v16, %v2389_v15 }
 0x461   : > { %v1175_v19 = vpop.f32.mrf.mxu1 }
 0x462   : > { %v1176_v20 = vadd.f32 %v2388_v17, %v1175_v19  ;;  %v1187_v21 = vsel %vm578_vm1, %v1181_v18, -inf }
 0x463   : > { %1188 = vmax.xlane.f32.xlu1 %v1187_v21  ;;  %v2405_v21 = vld [vmem:[%s3494_s2 + $0x58] sm:$0xff] }
 0x464   : > { %v1184_v22 = vsel %vm578_vm1, %v1176_v20, -inf }
 0x465   : > { %1185 = vmax.xlane.f32.xlu0 %v1184_v22 }
 0x474   : > { %1208 = vrot.lane.b32.xlu1 %v3063_v39, %s2854_s8 }
 0x4ec   : > { %v1189_v23 = vpop.xlane.xlu1 %1188 }
 0x4ed   : > { %v1191_v24 = vsub.f32 %v1181_v18, %v1189_v23  ;;  %v2404_v23 = vld [vmem:[%s3494_s2 + $0x50] sm:$0xff] }
 0x4ee   : > { %v1186_v25 = vpop.xlane.xlu0 %1185 }
 0x4ef   : > { %v1194_v26 = vmul.f32 1.442695, %v1191_v24  ;;  %v1190_v27 = vsub.f32 %v1176_v20, %v1186_v25 }
 0x4f0   : > { %v1209_v30 = vpop.permute.xlu1 %1208 }
 0x4f1   : > { %2749 = vpow2.f32 %v1194_v26  ;;  %v1192_v40 = vmul.f32 1.442695, %v1190_v27  ;;  %2587 = vmatprep.subr.mxu0 %v1209_v30 }
 0x4f2   : > { %2588 = vmatpush3.msra.mxu0 %v1209_v30 }
 0x4f3   : > { %2751 = vpow2.f32 %v1192_v40 }
 0x4fe   : > { %v2750_v41 = vpop.eup %2749 }
 0x4ff   : > { %v1199_v42 = vsel %vm578_vm1, %v2750_v41, 0.0 }
 0x500   : > { %v2752_v43 = vpop.eup %2751  ;;  %1200 = vadd.xlane.f32.xlu0 %v1199_v42 }
 0x501   : > { %v1196_v44 = vsel %vm578_vm1, %v2752_v43, 0.0 }
 0x504   : > { %1197 = vadd.xlane.f32.xlu0 %v1196_v44 }
 0x51a   : > { %1206 = vrot.lane.b32.xlu0 %v3047_v36, %s2854_s8  ;;  %v3191_v36 = vmul.f32 0.17677669, %v3027_v31 }
 0x589   : > { %v1201_v39 = vpop.xlane.xlu0 %1200 }
 0x58a   : > { %2753 = vrcp.f32 %v1201_v39 }
 0x58d   : > { %v1198_v45 = vpop.xlane.xlu0 %1197 }
 0x58e   : > { %2755 = vrcp.f32 %v1198_v45 }
 0x591   : > { %v1207_v46 = vpop.permute.xlu0 %1206 }
 0x592   : > { %2589 = vmatprep.subr.mxu0 %v1207_v46 }
 0x593   : > { %2590 = vmatpush3.msra.mxu0 %v1207_v46 }
 0x594   : > { %2594 = vmatprep.subr.msk.mxu0 %vm249_vm0, %v3041_v35 }
 0x597   : > { %v2754_v47 = vpop.eup %2753 }
 0x598   : > { %v1205_v51 = vmul.f32 %v2754_v47, %v2750_v41 }
 0x59b   : > { %v2756_v49 = vpop.eup %2755 }
 0x59c   : > { %v1204_v50 = vmul.f32 %v2756_v49, %v2752_v43 }
 0x59e   : > { %2591 = vmatprep.mubr.msk.f32.mxu0 %vm578_vm1, %v1204_v50 }
 0x59f   : > { %2592 = vmatmul.mubr.msk.f32.vlgmr.msra.gmra.mxu0 %vm578_vm1, %v1205_v51 }
 0x5a0   : > { %2595 = vmatpush3.xpose.msk.msra.mxu0 %vm249_vm0, %v3041_v35  ;;  %2598 = vmatprep.mubr.msk.f32.mxu0 %vm249_vm0, %v3178_v52 }
 0x5a1   : > { %2596 = vmatprep.subr.msk.mxu0 %vm249_vm0, %v3031_v33 }
 0x5a4   : > { %2597 = vmatpush3.xpose.msk.msra.mxu0 %vm249_vm0, %v3031_v33 }
 0x5a7   : > { %2599 = vmatmul.mubr.msk.f32.vlgmr.msra.gmra.mxu0 %vm249_vm0, %v3191_v36 }
 0x65f   : > { %v3195_v29 = vpop.f32.mrf.mxu0 }
 0x661   : > { %v3197_v53 = vpop.f32.mrf.mxu0 }
 0x667   : > { %v2600_v55 = vpop.f32.mrf.mxu0 }
 0x668   : > { %v1382_v56 = vadd.f32 %v2600_v55, %v2397_v54 }
 0x669   : > { %v1376_v57 = vpop.f32.mrf.mxu0 }
 0x66a   : > { %v1377_v31 = vadd.f32 %v2396_v32, %v1376_v57  ;;  %v1388_v58 = vsel %vm578_vm1, %v1382_v56, -inf }
 0x66b   : > { %1389 = vmax.xlane.f32.xlu0 %v1388_v58 }
 0x66c   : > { %v1385_v59 = vsel %vm578_vm1, %v1377_v31, -inf }
 0x66d   : > { %1386 = vmax.xlane.f32.xlu1 %v1385_v59 }
 0x67e   : > { %1497 = vrot.lane.b32.xlu1 %v3041_v35, %s2852_s9 }
 0x682   : > { %1491 = vrot.lane.b32.xlu1 %v3178_v52, %s2852_s9 }
 0x6f4   : > { %v1390_v28 = vpop.xlane.xlu0 %1389 }
 0x6f5   : > { %v1392_v34 = vsub.f32 %v1382_v56, %v1390_v28 }
 0x6f6   : > { %v1387_v60 = vpop.xlane.xlu1 %1386 }
 0x6f7   : > { %v1395_v61 = vmul.f32 1.442695, %v1392_v34  ;;  %v1391_v62 = vsub.f32 %v1377_v31, %v1387_v60 }
 0x6f9   : > { %2757 = vpow2.f32 %v1395_v61  ;;  %v1393_v63 = vmul.f32 1.442695, %v1391_v62  ;;  %v2413_v62 = vld [vmem:[%s3494_s2 + $0x68] sm:$0xff] }
 0x6fa   : > { %v1498_v0 = vpop.permute.xlu1 %1497 }
 0x6fb   : > { %2759 = vpow2.f32 %v1393_v63  ;;  %2608 = vmatprep.subr.msk.mxu1 %vm249_vm0, %v1498_v0 }
 0x6fe   : > { %v1492_v4 = vpop.permute.xlu1 %1491 }
 0x706   : > { %v2758_v1 = vpop.eup %2757 }
 0x707   : > { %v1400_v38 = vsel %vm578_vm1, %v2758_v1, 0.0 }
 0x708   : > { %v2760_v2 = vpop.eup %2759  ;;  %1401 = vadd.xlane.f32.xlu0 %v1400_v38 }
 0x709   : > { %v1397_v3 = vsel %vm578_vm1, %v2760_v2, 0.0 }
 0x70a   : > { %1398 = vadd.xlane.f32.xlu1 %v1397_v3 }
 0x71b   : > { %1493 = vrot.lane.b32.xlu1 %v3191_v36, %s2852_s9 }
 0x71e   : > { %1495 = vrot.lane.b32.xlu0 %v3031_v33, %s2852_s9 }
 0x791   : > { %v1402_v5 = vpop.xlane.xlu0 %1401 }
 0x792   : > { %2761 = vrcp.f32 %v1402_v5 }
 0x793   : > { %v1399_v6 = vpop.xlane.xlu1 %1398 }
 0x794   : > { %2763 = vrcp.f32 %v1399_v6 }
 0x795   : > { %v1496_v17 = vpop.permute.xlu0 %1495 }
 0x797   : > { %v1494_v18 = vpop.permute.xlu1 %1493 }
 0x79f   : > { %v2762_v7 = vpop.eup %2761 }
 0x7a0   : > { %v1406_v16 = vmul.f32 %v2762_v7, %v2758_v1 }
 0x7a1   : > { %v2764_v8 = vpop.eup %2763 }
 0x7a2   : > { %v1405_v15 = vmul.f32 %v2764_v8, %v2760_v2 }
 0x7a4   : > { %2605 = vmatprep.mubr.msk.f32.mxu1 %vm578_vm1, %v1405_v15 }
 0x7a5   : > { %2606 = vmatmul.mubr.msk.f32.vlgmr.msra.gmra.mxu1 %vm578_vm1, %v1406_v16 }
 0x7a6   : > { %2609 = vmatpush3.xpose.msk.msra.mxu1 %vm249_vm0, %v1498_v0  ;;  %2612 = vmatprep.mubr.msk.f32.mxu1 %vm249_vm0, %v1492_v4  ;;  %v2412_v0 = vld [vmem:[%s3494_s2 + $0x60] sm:$0xff] }
 0x7a7   : > { %2610 = vmatprep.subr.msk.mxu1 %vm249_vm0, %v1496_v17 }
 0x7aa   : > { %2611 = vmatpush3.xpose.msk.msra.mxu1 %vm249_vm0, %v1496_v17 }
 0x7ad   : > { %2613 = vmatmul.mubr.msk.f32.vlgmr.msra.gmra.mxu1 %vm249_vm0, %v1494_v18 }
 0x865   : > { %v3225_v19 = vpop.f32.mrf.mxu1 }
 0x867   : > { %v3227_v20 = vpop.f32.mrf.mxu1 }
 0x86d   : > { %v2614_v22 = vpop.f32.mrf.mxu1 }
 0x86e   : > { %v1579_v24 = vadd.f32 %v2614_v22, %v2405_v21 }
 0x86f   : > { %v1573_v25 = vpop.f32.mrf.mxu1 }
 0x870   : > { %v1574_v26 = vadd.f32 %v2404_v23, %v1573_v25  ;;  %v1585_v27 = vsel %vm578_vm1, %v1579_v24, -inf }
 0x871   : > { %1586 = vmax.xlane.f32.xlu1 %v1585_v27 }
 0x872   : > { %v1582_v30 = vsel %vm578_vm1, %v1574_v26, -inf }
 0x873   : > { %1583 = vmax.xlane.f32.xlu0 %v1582_v30 }
 0x882   : > { %1608 = vrot.lane.b32.xlu1 %v3085_v48, %s2852_s9 }
 0x886   : > { %1702 = vrot.lane.b32.xlu1 %v3041_v35, %s2853_s11 }
 0x88a   : > { %1700 = vrot.lane.b32.xlu1 %v3031_v33, %s2853_s11 }
 0x88e   : > { %1698 = vrot.lane.b32.xlu1 %v3191_v36, %s2853_s11 }
 0x8fa   : > { %v1587_v40 = vpop.xlane.xlu1 %1586 }
 0x8fb   : > { %v1589_v41 = vsub.f32 %v1579_v24, %v1587_v40 }
 0x8fc   : > { %v1584_v42 = vpop.xlane.xlu0 %1583 }
 0x8fd   : > { %v1592_v43 = vmul.f32 1.442695, %v1589_v41  ;;  %v1588_v44 = vsub.f32 %v1574_v26, %v1584_v42 }
 0x8fe   : > { %v1609_v39 = vpop.permute.xlu1 %1608 }
 0x8ff   : > { %2765 = vpow2.f32 %v1592_v43  ;;  %v1590_v45 = vmul.f32 1.442695, %v1588_v44  ;;  %2615 = vmatprep.subr.mxu0 %v1609_v39  ;;  %v2421_v44 = vld [vmem:[%s3494_s2 + $0x78] sm:$0xff] }
 0x900   : > { %2616 = vmatpush3.msra.mxu0 %v1609_v39 }
 0x901   : > { %2767 = vpow2.f32 %v1590_v45  ;;  %v2420_v45 = vld [vmem:[%s3494_s2 + $0x70] sm:$0xff] }
 0x902   : > { %v1703_v32 = vpop.permute.xlu1 %1702 }
 0x906   : > { %v1701_v28 = vpop.permute.xlu1 %1700 }
 0x90a   : > { %v1699_v34 = vpop.permute.xlu1 %1698 }
 0x90c   : > { %v2766_v46 = vpop.eup %2765 }
 0x90d   : > { %v1597_v47 = vsel %vm578_vm1, %v2766_v46, 0.0 }
 0x90e   : > { %v2768_v49 = vpop.eup %2767  ;;  %1598 = vadd.xlane.f32.xlu0 %v1597_v47 }
 0x90f   : > { %v1594_v50 = vsel %vm578_vm1, %v2768_v49, 0.0 }
 0x912   : > { %1595 = vadd.xlane.f32.xlu0 %v1594_v50 }
 0x928   : > { %1606 = vrot.lane.b32.xlu0 %v3053_v37, %s2852_s9 }
 0x92c   : > { %1696 = vrot.lane.b32.xlu0 %v3178_v52, %s2853_s11 }
 0x997   : > { %v1599_v51 = vpop.xlane.xlu0 %1598 }
 0x998   : > { %2769 = vrcp.f32 %v1599_v51 }
 0x99b   : > { %v1596_v54 = vpop.xlane.xlu0 %1595 }
 0x99c   : > { %2771 = vrcp.f32 %v1596_v54 }
 0x99f   : > { %v1607_v55 = vpop.permute.xlu0 %1606 }
 0x9a0   : > { %2617 = vmatprep.subr.mxu0 %v1607_v55 }
 0x9a1   : > { %2618 = vmatpush3.msra.mxu0 %v1607_v55 }
 0x9a2   : > { %2622 = vmatprep.subr.msk.mxu0 %vm249_vm0, %v1703_v32 }
 0x9a3   : > { %v1697_v59 = vpop.permute.xlu0 %1696 }
 0x9a5   : > { %v2770_v56 = vpop.eup %2769 }
 0x9a6   : > { %v1603_v58 = vmul.f32 %v2770_v56, %v2766_v46 }
 0x9a9   : > { %v2772_v57 = vpop.eup %2771 }
 0x9aa   : > { %v1602_v31 = vmul.f32 %v2772_v57, %v2768_v49 }
 0x9ac   : > { %2619 = vmatprep.mubr.msk.f32.mxu0 %vm578_vm1, %v1602_v31 }
 0x9ad   : > { %2620 = vmatmul.mubr.msk.f32.vlgmr.msra.gmra.mxu0 %vm578_vm1, %v1603_v58 }
 0x9ae   : > { %2623 = vmatpush3.xpose.msk.msra.mxu0 %vm249_vm0, %v1703_v32  ;;  %2626 = vmatprep.mubr.msk.f32.mxu0 %vm249_vm0, %v1697_v59 }
 0x9af   : > { %2624 = vmatprep.subr.msk.mxu0 %vm249_vm0, %v1701_v28 }
 0x9b2   : > { %2625 = vmatpush3.xpose.msk.msra.mxu0 %vm249_vm0, %v1701_v28 }
 0x9b5   : > { %2627 = vmatmul.mubr.msk.f32.vlgmr.msra.gmra.mxu0 %vm249_vm0, %v1699_v34 }
 0xa6d   : > { %v3259_v60 = vpop.f32.mrf.mxu0 }
 0xa6e   : > { %v2705_v32 = vpack.i.bf16 %v3153_v11, %v3259_v60 }
 0xa6f   : > { %v3261_v61 = vpop.f32.mrf.mxu0 }
 0xa70   : > { %v2695_v54 = vpack.i.bf16 %v3155_v12, %v3261_v61 }
 0xa75   : > { %v2628_v63 = vpop.f32.mrf.mxu0 }
 0xa76   : > { %v1784_v1 = vadd.f32 %v2628_v63, %v2413_v62 }
 0xa77   : > { %v1778_v38 = vpop.f32.mrf.mxu0 }
 0xa78   : > { %v1779_v2 = vadd.f32 %v2412_v0, %v1778_v38  ;;  %v1790_v3 = vsel %vm578_vm1, %v1784_v1, -inf }
 0xa79   : > { %1791 = vmax.xlane.f32.xlu1 %v1790_v3  ;;  %v2191_v3 = vld [vmem:[%s3495_s3 + $0xf0] sm:$0xff] }
 0xa7a   : > { %v1787_v4 = vsel %vm578_vm1, %v1779_v2, -inf }
 0xa7b   : > { %1788 = vmax.xlane.f32.xlu0 %v1787_v4  ;;  %v2175_v4 = vld [vmem:[%s3495_s3 + $0x70] sm:$0xff] }
 0xa8a   : > { %1811 = vrot.lane.b32.xlu1 %v3085_v48, %s2853_s11 }
 0xa8e   : > { %1905 = vrot.lane.b32.xlu1 %v3041_v35, %s2854_s8 }
 0xa92   : > { %1903 = vrot.lane.b32.xlu1 %v3031_v33, %s2854_s8 }
 0xa96   : > { %1901 = vrot.lane.b32.xlu1 %v3191_v36, %s2854_s8 }
 0xb02   : > { %v1792_v5 = vpop.xlane.xlu1 %1791 }
 0xb03   : > { %v1794_v6 = vsub.f32 %v1784_v1, %v1792_v5  ;;  %v2190_v5 = vld [vmem:[%s3495_s3 + $0xe8] sm:$0xff] }
 0xb04   : > { %v1789_v7 = vpop.xlane.xlu0 %1788 }
 0xb05   : > { %v1797_v8 = vmul.f32 1.442695, %v1794_v6  ;;  %v1793_v15 = vsub.f32 %v1779_v2, %v1789_v7  ;;  %v2192_v2 = vld [vmem:[%s3495_s3 + $0xf8] sm:$0xff]  ;;  %v2174_v6 = vld [vmem:[%s3495_s3 + $0x68] sm:$0xff]  ;;  %v2189_v7 = vld [vmem:[%s3495_s3 + $0xe0] sm:$0xff] }
 0xb06   : > { %v1812_v16 = vpop.permute.xlu1 %1811 }
 0xb07   : > { %2773 = vpow2.f32 %v1797_v8  ;;  %v1795_v17 = vmul.f32 1.442695, %v1793_v15  ;;  %2629 = vmatprep.subr.mxu1 %v1812_v16  ;;  %v2173_v8 = vld [vmem:[%s3495_s3 + $0x60] sm:$0xff]  ;;  %v2188_v15 = vld [vmem:[%s3495_s3 + $0xd8] sm:$0xff] }
 0xb08   : > { %2630 = vmatpush3.msra.mxu1 %v1812_v16  ;;  %v2172_v16 = vld [vmem:[%s3495_s3 + $0x58] sm:$0xff] }
 0xb09   : > { %2775 = vpow2.f32 %v1795_v17  ;;  %v2187_v17 = vld [vmem:[%s3495_s3 + $0xd0] sm:$0xff] }
 0xb0a   : > { %v1906_v24 = vpop.permute.xlu1 %1905 }
 0xb14   : > { %v2774_v18 = vpop.eup %2773 }
 0xb15   : > { %v1802_v35 = vsel %vm578_vm1, %v2774_v18, 0.0 }
 0xb16   : > { %v2776_v21 = vpop.eup %2775  ;;  %1803 = vadd.xlane.f32.xlu0 %v1802_v35  ;;  %v2186_v35 = vld [vmem:[%s3495_s3 + $0xc8] sm:$0xff] }
 0xb17   : > { %v1799_v33 = vsel %vm578_vm1, %v2776_v21, 0.0 }
 0xb1a   : > { %1800 = vadd.xlane.f32.xlu0 %v1799_v33  ;;  %v2185_v33 = vld [vmem:[%s3495_s3 + $0xc0] sm:$0xff] }
 0xb30   : > { %1809 = vrot.lane.b32.xlu0 %v3053_v37, %s2853_s11 }
 0xb34   : > { %1899 = vrot.lane.b32.xlu0 %v3178_v52, %s2854_s8  ;;  %v1904_v52 = vpop.permute.xlu1 %1903 }
 0xb38   : > { %v1902_v41 = vpop.permute.xlu1 %1901 }
 0xb9f   : > { %v1804_v36 = vpop.xlane.xlu0 %1803 }
 0xba0   : > { %2777 = vrcp.f32 %v1804_v36  ;;  %v2169_v36 = vld [vmem:[%s3495_s3 + $0x40] sm:$0xff] }
 0xba3   : > { %v1801_v22 = vpop.xlane.xlu0 %1800 }
 0xba4   : > { %2779 = vrcp.f32 %v1801_v22  ;;  %v2184_v22 = vld [vmem:[%s3495_s3 + $0xb8] sm:$0xff] }
 0xba7   : > { %v1810_v23 = vpop.permute.xlu0 %1809 }
 0xba8   : > { %2631 = vmatprep.subr.mxu1 %v1810_v23 }
 0xba9   : > { %2632 = vmatpush3.msra.mxu1 %v1810_v23  ;;  %v2168_v23 = vld [vmem:[%s3495_s3 + $0x38] sm:$0xff] }
 0xbaa   : > { %2636 = vmatprep.subr.msk.mxu1 %vm249_vm0, %v1906_v24 }
 0xbab   : > { %v1900_v40 = vpop.permute.xlu0 %1899 }
 0xbad   : > { %v2778_v25 = vpop.eup %2777 }
 0xbae   : > { %v1808_v30 = vmul.f32 %v2778_v25, %v2774_v18  ;;  %v2171_v18 = vld [vmem:[%s3495_s3 + $0x50] sm:$0xff] }
 0xbaf   : > { %v2167_v25 = vld [vmem:[%s3495_s3 + $0x30] sm:$0xff] }
 0xbb1   : > { %v2780_v26 = vpop.eup %2779 }
 0xbb2   : > { %v1807_v27 = vmul.f32 %v2780_v26, %v2776_v21  ;;  %v2170_v21 = vld [vmem:[%s3495_s3 + $0x48] sm:$0xff] }
 0xbb3   : > { %v2182_v26 = vld [vmem:[%s3495_s3 + $0xa8] sm:$0xff] }
 0xbb4   : > { %2633 = vmatprep.mubr.msk.f32.mxu1 %vm578_vm1, %v1807_v27  ;;  %v2166_v27 = vld [vmem:[%s3495_s3 + $0x28] sm:$0xff] }
 0xbb5   : > { %2634 = vmatmul.mubr.msk.f32.vlgmr.msra.gmra.mxu1 %vm578_vm1, %v1808_v30  ;;  %v2181_v30 = vld [vmem:[%s3495_s3 + $0xa0] sm:$0xff] }
 0xbb6   : > { %2637 = vmatpush3.xpose.msk.msra.mxu1 %vm249_vm0, %v1906_v24  ;;  %2640 = vmatprep.mubr.msk.f32.mxu1 %vm249_vm0, %v1900_v40  ;;  %v2183_v24 = vld [vmem:[%s3495_s3 + $0xb0] sm:$0xff]  ;;  %v2165_v40 = vld [vmem:[%s3495_s3 + $0x20] sm:$0xff] }
 0xbb7   : > { %2638 = vmatprep.subr.msk.mxu1 %vm249_vm0, %v1904_v52 }
 0xbba   : > { %2639 = vmatpush3.xpose.msk.msra.mxu1 %vm249_vm0, %v1904_v52  ;;  %v2180_v52 = vld [vmem:[%s3495_s3 + $0x98] sm:$0xff] }
 0xbbd   : > { %2641 = vmatmul.mubr.msk.f32.vlgmr.msra.gmra.mxu1 %vm249_vm0, %v1902_v41  ;;  %v2164_v41 = vld [vmem:[%s3495_s3 + $0x18] sm:$0xff] }
 0xc75   : > { %v3293_v42 = vpop.f32.mrf.mxu1 }
 0xc77   : > { %v1887_v43 = vpop.f32.mrf.mxu1 }
 0xc78   : > { %v2700_v55 = vpack.i.bf16 %v3159_v14, %v1887_v43  ;;  %v2179_v43 = vld [vmem:[%s3495_s3 + $0x90] sm:$0xff] }
 0xc7d   : > { %v2642_v39 = vpop.f32.mrf.mxu1 }
 0xc7e   : > { %v1987_v46 = vadd.f32 %v2642_v39, %v2421_v44  ;;  %v2163_v44 = vld [vmem:[%s3495_s3 + $0x10] sm:$0xff]  ;;  %v2178_v39 = vld [vmem:[%s3495_s3 + $0x88] sm:$0xff] }
 0xc7f   : > { %v1981_v47 = vpop.f32.mrf.mxu1 }
 0xc80   : > { %v1982_v49 = vadd.f32 %v2420_v45, %v1981_v47  ;;  %v1993_v50 = vsel %vm578_vm1, %v1987_v46, -inf  ;;  %v2162_v45 = vld [vmem:[%s3495_s3 + $0x8] sm:$0xff]  ;;  %v2161_v47 = vld [vmem:[%s3495_s3] sm:$0xff] }
 0xc81   : > { %1994 = vmax.xlane.f32.xlu1 %v1993_v50 }
 0xc82   : > { %v1990_v51 = vsel %vm578_vm1, %v1982_v49, -inf }
 0xc83   : > { %1991 = vmax.xlane.f32.xlu0 %v1990_v51 }
 0xc92   : > { %2014 = vrot.lane.b32.xlu1 %v3085_v48, %s2854_s8 }
 0xc96   : > { %2696 = vrot.lane.b32.xlu1 %v2695_v54, %s2854_s8 }
 0xc9a   : > { %2701 = vrot.lane.b32.xlu1 %v2700_v55, %s2853_s11  ;;  %v2715_v55 = vpack.i.bf16 %v3157_v13, %v3293_v42 }
 0xc9e   : > { %2706 = vrot.lane.b32.xlu1 %v2705_v32, %s2854_s8 }
 0xd0a   : > { %v1995_v56 = vpop.xlane.xlu1 %1994 }
 0xd0b   : > { %v1997_v57 = vsub.f32 %v1987_v46, %v1995_v56  ;;  %v2177_v46 = vld [vmem:[%s3495_s3 + $0x80] sm:$0xff] }
 0xd0c   : > { %v1992_v31 = vpop.xlane.xlu0 %1991 }
 0xd0d   : > { %v2000_v58 = vmul.f32 1.442695, %v1997_v57  ;;  %v1996_v59 = vsub.f32 %v1982_v49, %v1992_v31 }
 0xd0e   : > { %v2015_v48 = vpop.permute.xlu1 %2014 }
 0xd0f   : > { %2781 = vpow2.f32 %v2000_v58  ;;  %v1998_v28 = vmul.f32 1.442695, %v1996_v59  ;;  %2643 = vmatprep.subr.mxu0 %v2015_v48 }
 0xd10   : > { %2644 = vmatpush3.msra.mxu0 %v2015_v48 }
 0xd11   : > { %2783 = vpow2.f32 %v1998_v28 }
 0xd12   : > { %v2697_v32 = vpop.permute.xlu1 %2696 }
 0xd13   : > { %v2699_v57 = vunpack.i.h.bf16 %v2697_v32  ;;  %v2698_v31 = vunpack.i.l.bf16 %v2697_v32 }
 0xd15   : > { %v2155_v13 = vsel %vm249_vm0, %v3227_v20, %v2698_v31 }
 0xd16   : > { %v2702_v56 = vpop.permute.xlu1 %2701 }
 0xd17   : > { %v2704_v58 = vunpack.i.h.bf16 %v2702_v56  ;;  %v2703_v59 = vunpack.i.l.bf16 %v2702_v56 }
 0xd1a   : > { %v2707_v48 = vpop.permute.xlu1 %2706 }
 0xd1b   : > { %v2709_v42 = vunpack.i.h.bf16 %v2707_v48 }
 0xd1c   : > { %v2782_v12 = vpop.eup %2781 }
 0xd1d   : > { %v2005_v14 = vsel %vm578_vm1, %v2782_v12, 0.0 }
 0xd1e   : > { %v2784_v34 = vpop.eup %2783  ;;  %2006 = vadd.xlane.f32.xlu0 %v2005_v14  ;;  %v2708_v14 = vunpack.i.l.bf16 %v2707_v48 }
 0xd1f   : > { %v2002_v11 = vsel %vm578_vm1, %v2784_v34, 0.0 }
 0xd20   : > { %v2156_v20 = vsel %vm249_vm0, %v3225_v19, %v2708_v14  ;;  %v2428_v19 = vld [vmem:[%s3496_s4] ss:$0 sm:$0xff] }
 0xd22   : > { %2003 = vadd.xlane.f32.xlu0 %v2002_v11 }
 0xd38   : > { %2012 = vrot.lane.b32.xlu0 %v3053_v37, %s2854_s8  ;;  %v2176_v37 = vld [vmem:[%s3495_s3 + $0x78] sm:$0xff] }
 0xda7   : > { %v2007_v60 = vpop.xlane.xlu0 %2006 }
 0xda8   : > { %2785 = vrcp.f32 %v2007_v60 }
 0xdab   : > { %v2004_v61 = vpop.xlane.xlu0 %2003 }
 0xdac   : > { %2787 = vrcp.f32 %v2004_v61 }
 0xdaf   : > { %v2013_v62 = vpop.permute.xlu0 %2012 }
 0xdb0   : > { %2645 = vmatprep.subr.mxu0 %v2013_v62 }
 0xdb1   : > { %2646 = vmatpush3.msra.mxu0 %v2013_v62 }
 0xdb2   : > { %2500 = vmatprep.subr.mxu0 %v2192_v2  ;;  %v2148_v2 = vsel %vm249_vm0, %v3149_v9, %v2709_v42 }
 0xdb5   : > { %v2786_v63 = vpop.eup %2785 }
 0xdb6   : > { %v2011_v38 = vmul.f32 %v2786_v63, %v2782_v12 }
 0xdb9   : > { %v2788_v0 = vpop.eup %2787 }
 0xdba   : > { %v2010_v1 = vmul.f32 %v2788_v0, %v2784_v34  ;;  %v2157_v34 = vsel %vm2149_vm2, %v2155_v13, %v2703_v59 }
 0xdbc   : > { %2647 = vmatprep.mubr.msk.f32.mxu0 %vm578_vm1, %v2010_v1 }
 0xdbd   : > { %2648 = vmatmul.mubr.msk.f32.vlgmr.msra.gmra.mxu0 %vm578_vm1, %v2011_v38 }
 0xdbe   : > { %2501 = vmatpush3.msra.mxu0 %v2176_v37 }
 0xdbf   : > { %2502 = vmatprep.subr.mxu0 %v2191_v3 }
 0xdc0   : > { %2503 = vmatpush3.msra.mxu0 %v2175_v4 }
 0xdc1   : > { %2504 = vmatprep.subr.mxu0 %v2190_v5 }
 0xdc2   : > { %2505 = vmatpush3.msra.mxu0 %v2174_v6 }
 0xdc3   : > { %2506 = vmatprep.subr.mxu0 %v2189_v7 }
 0xdc4   : > { %2507 = vmatpush3.msra.mxu0 %v2173_v8 }
 0xdc5   : > { %2508 = vmatprep.subr.mxu0 %v2188_v15 }
 0xdc6   : > { %2509 = vmatpush3.msra.mxu0 %v2172_v16 }
 0xdc7   : > { %2510 = vmatprep.subr.mxu0 %v2187_v17 }
 0xdc8   : > { %2511 = vmatpush3.msra.mxu0 %v2171_v18 }
 0xdc9   : > { %2512 = vmatprep.subr.mxu0 %v2186_v35 }
 0xdca   : > { %2513 = vmatpush3.msra.mxu0 %v2170_v21 }
 0xdcb   : > { %2514 = vmatprep.subr.mxu0 %v2185_v33 }
 0xdcc   : > { %2515 = vmatpush3.msra.mxu0 %v2169_v36 }
 0xdcd   : > { %2516 = vmatprep.subr.mxu0 %v2184_v22 }
 0xdce   : > { %2517 = vmatpush3.msra.mxu0 %v2168_v23 }
 0xdcf   : > { %2518 = vmatprep.subr.mxu0 %v2183_v24 }
 0xdd0   : > { %2519 = vmatpush3.msra.mxu0 %v2167_v25 }
 0xdd1   : > { %2520 = vmatprep.subr.mxu0 %v2182_v26 }
 0xdd2   : > { %2521 = vmatpush3.msra.mxu0 %v2166_v27 }
 0xdd3   : > { %2522 = vmatprep.subr.mxu0 %v2181_v30 }
 0xdd4   : > { %2523 = vmatpush3.msra.mxu0 %v2165_v40 }
 0xdd5   : > { %2524 = vmatprep.subr.mxu0 %v2180_v52 }
 0xdd6   : > { %2525 = vmatpush3.msra.mxu0 %v2164_v41 }
 0xdd7   : > { %2526 = vmatprep.subr.mxu0 %v2179_v43 }
 0xdd8   : > { %2527 = vmatpush3.msra.mxu0 %v2163_v44 }
 0xdd9   : > { %2528 = vmatprep.subr.mxu0 %v2178_v39 }
 0xdda   : > { %2529 = vmatpush3.msra.mxu0 %v2162_v45 }
 0xddb   : > { %2530 = vmatprep.subr.mxu0 %v2177_v46 }
 0xddc   : > { %2531 = vmatpush3.msra.mxu0 %v2161_v47 }
 0xe7d   : > { %v2649_v49 = vpop.f32.mrf.mxu0 }
 0xe7e   : > { %v2720_v50 = vpack.i.bf16 %v3195_v29, %v2649_v49 }
 0xe7f   : > { %v2090_v51 = vpop.f32.mrf.mxu0 }
 0xe80   : > { %v2710_v54 = vpack.i.bf16 %v3197_v53, %v2090_v51  ;;  %2721 = vrot.lane.b32.xlu1 %v2720_v50, %s2852_s9  ;;  %v2147_v53 = vsel %vm249_vm0, %v3151_v10, %v2699_v57 }
 0xe81   : > { %v2150_v11 = vsel %vm2149_vm2, %v2147_v53, %v2704_v58 }
 0xe82   : > { %2711 = vrot.lane.b32.xlu0 %v2710_v54, %s2852_s9  ;;  %s215_s9 = sand.u32 1, %s2841_s19  }
 0xe83   : > { %s3452_s8 = scalar_lea.sflag [#allocation3], %s215_s9 }
 0xe86   : > { %2716 = vrot.lane.b32.xlu0 %v2715_v55, %s2853_s11  ;;  %s2357_s11 = sshll.u32 %s215_s9, 4 }
 0xe87   : > { %s217_s14 = scalar_lea.vmem [#allocation2], %s2357_s11 }
 0xe88   : > { %s2291_s15 = sshll.u32 %s217_s14, 4  ;;  %s3449_s15 = int_to_ptr.vmem [resolvable:$true] %s2291_s15 }
 0xe89   : > { %s2789_s22 = scalar_lea.vmem %s3449_s15, 256  ;;  %p2796_p0 = scmp.lt.s32.totalorder %s3449_s15, %s2794_s30 }
 0xe8a   : > { %p2790_p11 = scmp.ne.s32.totalorder %s3449_s15, %s2789_s22  ;;  %p2797_p1 = scmp.lt.s32.totalorder %s2795_s6, %s2789_s22 }
 0xe8c   : > { %p2791_p12 = pnand %p2790_p11, %p2926_p5  ;;  %p2798_p2 = por %p2797_p1, %p2796_p0 }
 0xe8e   : > { %p2792_p13 = pneg %p2791_p12 }
 0xe90   : > { %p2799_p3 = pnand %p2798_p2, %p2792_p13 }
 0xef2   : > { %v2722_v60 = vpop.permute.xlu1 %2721 }
 0xef3   : > { %v2724_v1 = vunpack.i.h.bf16 %v2722_v60  ;;  %v2723_v38 = vunpack.i.l.bf16 %v2722_v60 }
 0xef4   : > { %v2712_v29 = vpop.permute.xlu0 %2711 }
 0xef5   : > { %v2714_v28 = vunpack.i.h.bf16 %v2712_v29  ;;  %v2713_v12 = vunpack.i.l.bf16 %v2712_v29 }
 0xef7   : > { %v2159_v61 = vsel %vm2152_vm3, %v2157_v34, %v2713_v12  ;;  %v2153_v62 = vsel %vm2152_vm3, %v2150_v11, %v2714_v28 }
 0xef8   : > { %v2717_v63 = vpop.permute.xlu0 %2716  ;;  %2264 = vmatprep.mubr.f32.mxu0 %v2159_v61 }
 0xef9   : > { %v2719_v10 = vunpack.i.h.bf16 %v2717_v63  ;;  %v2718_v0 = vunpack.i.l.bf16 %v2717_v63  ;;  %2265 = vmatmul.mubr.f32.vlgmr.msra.gmra.mxu0 %v2153_v62 }
 0xefb   : > { %v2158_v37 = vsel %vm2149_vm2, %v2156_v20, %v2718_v0  ;;  %v2151_v3 = vsel %vm2149_vm2, %v2148_v2, %v2719_v10 }
 0xefc   : > { %v2160_v4 = vsel %vm2152_vm3, %v2158_v37, %v2723_v38  ;;  %v2154_v5 = vsel %vm2152_vm3, %v2151_v3, %v2724_v1 }
 0xefd   : > { %2269 = vmatprep.mubr.f32.mxu0 %v2160_v4 }
 0xefe   : > { %2270 = vmatmul.mubr.f32.gmra.mxu0 %v2154_v5 }
 0xfb9   : > { %v2532_v6 = vpop.f32.mrf.mxu0 }
 0xfbb   : > { %v2533_v7 = vpop.f32.mrf.mxu0 }
 0xfbc   : > { %v2534_v9 = vadd.f32 %v2533_v7, %v2532_v6 }
 0xfbe   : > { %v2267_v8 = vadd.f32 %v2534_v9, %v2428_v19  ;;  %v2535_v15 = vpop.f32.mrf.mxu0 }
 0xfc0   : > { %2275 = vst.msk [vmem:[%s217_s14] sm:$0xff] %vm249_vm0, %v2267_v8  ;;  %v2536_v16 = vpop.f32.mrf.mxu0 }
 0xfc1   : > { %v2537_v17 = vadd.f32 %v2536_v16, %v2535_v15 }
 0xfc3   : > { %v2272_v18 = vadd.f32 %v2537_v17, %v2428_v19 }
 0xfc5   : > { %2276 = vst.msk [vmem:[%s217_s14 + $0x8] sm:$0xff] %vm249_vm0, %v2272_v18 }
 0xfc6   : > { %2802 = shalt.err (!%p2799_p3)
}
 0xfc7   : > { %s2803_s7 = scalar_lea.hbm %s3447_s25, 256  ;;  %s2807_s11 = scalar_lea.hbm %s3497_s5, 512 }
 0xfc8   : > { %p2804_p4 = scmp.ne.s32.totalorder %s3447_s25, %s2803_s7  ;;  %p2808_p9 = scmp.lt.s32.totalorder %s3447_s25, %s3497_s5 }
 0xfc9   : > { %p2809_p10 = scmp.lt.s32.totalorder %s2807_s11, %s2803_s7 }
 0xfca   : > { %p2805_p7 = pnand %p2804_p4, %p2926_p5 }
 0xfcb   : > { %p2810_p11 = por %p2809_p10, %p2808_p9 }
 0xfcc   : > { %p2806_p8 = pneg %p2805_p7 }
 0xfce   : > { %p2811_p12 = pnand %p2810_p11, %p2806_p8 }
 0xfd0   : > { %2814 = shalt.err (!%p2811_p12)
}
 0xfd1   : > { %s2856_s14 = smov 128   ;;  %s2857_s16 = smov 8  }
 0xfd2   : > { %2650 = dma.vmem_to_hbm [thread:$0]  (%p2926_p5), %s3449_s15, 256, %s3447_s25, %s3452_s8, %s2856_s14, %s2856_s14, %s2857_s16  }
 0xfd3 PF: > { %p2656_p13 = scmp.ge.s32.totalorder %s2849_s21, 2  ;;  %s2306_s17 = sand.u32 1, %s2837_s18  }
 0xfd4   : > { %s2307_s23 = scalar_lea.sflag [#allocation3], %s2306_s17 }
 0xfd5   : > { %p2653_p0 = pnand %p2656_p13, %p2930_p6 }
 0xfd7   : > { %p2654_p1 = pneg %p2653_p0 }
 0xfd9   : > { %2832 = dma.done.wait (%p2654_p1), %s2307_s23, 256  }
 0xfda   : > { %2834 = vsyncadd (%p2654_p1), %s2307_s23, 4294967040  ;;  %p15_p2 = scmp.ge.s32.totalorder %s2913_s24, 4   ;;  %s3500_s18 = smov %s2841_s19 }
 0xfdb   : > { %s3501_s19 = smov %s2845_s20  ;;  %s3502_s20 = smov %s2924_s27 }
 0xfdc   : > { %s3503_s21 = smov %s2913_s24  ;;  %17 = sbr.rel (!%p15_p2) target bundleno = 3 (0x3), region = 82 }
 0xfe1   :  { %2312 = vsyncpa [#allocation3], 1 }
 0xfe2   :  { %2314 = vsyncpa [#allocation3 + $0x1], 1 }

</bundles_post_ra>
